<compile_context>
chip_gen: v7x
topology: tpu7x:2x2x1
jax: 0.10.0
libtpu: 0.0.40
codegen_flags: <defaults>
</compile_context>

<pallas_src>
import math
import functools

import jax
import jax.numpy as jnp
from jax.experimental import pallas as pl
from jax.experimental.pallas import tpu as pltpu

_VMEM_LIMIT = 48 * 1024 * 1024  # headroom under v7x 64 MiB physical VMEM; fine on v5e/v6e
_LN_EPS = 1e-4


# ------------------------------ fused kernels --------------------------------

def attn_block_kernel(x_ref, c_ref, mq_ref, mk_ref,
                      wqkv_ref, bqkv_ref, wo_ref, bo_ref,
                      g_ref, beta_ref, trig_q_ref, trig_k_ref,
                      o_ref, *, n_heads, scale, causal, fuse_qkv, eps):
    """Fused MHA block: QKV proj + RoPE + attention + out-proj + residual + LN."""
    Tq, C = x_ref.shape[1], x_ref.shape[2]
    Tk = c_ref.shape[1]
    Dk = C // n_heads
    dr = Dk // 2            # rotary features per head (k_channels * 0.5)
    half = dr // 2

    x = x_ref[0]                                   # (Tq, C) f32 residual input
    xb = x.astype(jnp.bfloat16)

    # ---- fused QKV projection (1x1 convs) on the MXU, bf16 in / f32 acc ----
    if fuse_qkv:   # self-attention: single (C, 3C) matmul
        qkv = jnp.dot(xb, wqkv_ref[...], preferred_element_type=jnp.float32) + bqkv_ref[...]
        q, k, v = qkv[:, :C], qkv[:, C:2 * C], qkv[:, 2 * C:]
    else:          # cross-attention: q from x, fused kv from context c
        cb = c_ref[0].astype(jnp.bfloat16)
        q = (jnp.dot(xb, wqkv_ref[:, :C], preferred_element_type=jnp.float32)
             + bqkv_ref[:, :C])
        kv = (jnp.dot(cb, wqkv_ref[:, C:], preferred_element_type=jnp.float32)
              + bqkv_ref[:, C:])
        k, v = kv[:, :C], kv[:, C:]

    # ---- RoPE applied once to full-width q/k (all heads at once, f32) ----
    # trig rows: [0]=cos (1 on pass-through dims), [1]=-sin on first rotary half,
    #            [2]=+sin on second rotary half (0 elsewhere).  The circular shifts
    # never leak across head boundaries where sin is non-zero.
    def rope(t, trig_ref):
        cos, sin_m, sin_p = trig_ref[0], trig_ref[1], trig_ref[2]
        left = jnp.concatenate([t[:, half:], t[:, :half]], axis=-1)     # col j -> t[:, j+half]
        right = jnp.concatenate([t[:, -half:], t[:, :-half]], axis=-1)  # col j -> t[:, j-half]
        return t * cos + left * sin_m + right * sin_p

    q = rope(q, trig_q_ref)
    k = rope(k, trig_k_ref)

    # ---- attention mask built in-kernel (no (B,Tq,Tk) HBM mask traffic) ----
    if causal:
        row = jax.lax.broadcasted_iota(jnp.int32, (Tq, Tk), 0)
        col = jax.lax.broadcasted_iota(jnp.int32, (Tq, Tk), 1)
        keep = row >= col
    else:
        # outer product of the two per-sequence masks -> boolean keep (Tq, Tk)
        keep = (mq_ref[0] * mk_ref[0]) > 0.5

    qb = (q * scale).astype(jnp.bfloat16)          # fold 1/sqrt(Dk) into q once
    kb = k.astype(jnp.bfloat16)
    vb = v.astype(jnp.bfloat16)

    # ---- per-head attention; contexts gathered then projected in ONE MXU dot ----
    ctxs = []
    for h_i in range(n_heads):
        s0, s1 = h_i * Dk, (h_i + 1) * Dk
        # contract last dims directly (no k.T transpose)
        s = jax.lax.dot_general(qb[:, s0:s1], kb[:, s0:s1],
                                (((1,), (1,)), ((), ())),
                                preferred_element_type=jnp.float32)
        s = jnp.where(keep, s, jnp.float32(-1e4))
        m = jnp.max(s, axis=-1, keepdims=True)
        e = jnp.exp(s - m)
        denom = jnp.sum(e, axis=-1, keepdims=True)
        r = pl.reciprocal(denom, approx=True)                 # EUP estimate
        r = r * (2.0 - denom * r)                             # 1 Newton step -> f32 accuracy
        p = e * r
        ctxs.append(jnp.dot(p.astype(jnp.bfloat16), vb[:, s0:s1],
                            preferred_element_type=jnp.float32))   # (Tq, Dk)

    ctx_all = jnp.concatenate(ctxs, axis=-1).astype(jnp.bfloat16)  # (Tq, C)
    proj = jnp.dot(ctx_all, wo_ref[...],
                   preferred_element_type=jnp.float32) + bo_ref[...]

    # ---- residual + channel-dim LayerNorm epilogue ----
    z = x + proj
    mean = jnp.mean(z, axis=-1, keepdims=True)
    var = jnp.mean((z - mean) ** 2, axis=-1, keepdims=True)
    o_ref[0] = ((z - mean) * jax.lax.rsqrt(var + eps)) * g_ref[...] + beta_ref[...]


def ffn_block_kernel(x_ref, m_ref, w1_ref, b1_ref, w2_ref, b2_ref,
                     g_ref, beta_ref, o_ref, *, eps):
    """Fused FFN (mask -> conv1 -> relu -> mask -> conv2 -> mask) + residual + LN."""
    x = x_ref[0]                                   # (Tt, C) f32
    m = m_ref[0]                                   # (Tt, 1)
    h = jnp.dot((x * m).astype(jnp.bfloat16), w1_ref[...],
                preferred_element_type=jnp.float32) + b1_ref[...]
    h = jnp.maximum(h, 0.0) * m
    y = jnp.dot(h.astype(jnp.bfloat16), w2_ref[...],
                preferred_element_type=jnp.float32) + b2_ref[...]
    y = y * m
    z = x + y
    mean = jnp.mean(z, axis=-1, keepdims=True)
    var = jnp.mean((z - mean) ** 2, axis=-1, keepdims=True)
    o_ref[0] = ((z - mean) * jax.lax.rsqrt(var + eps)) * g_ref[...] + beta_ref[...]


# -------------------------------- wrappers ------------------------------------

def attn_block(x, c, mq, mk_row, wqkv, bqkv, wo, bo, ln_g, ln_b,
               trig_q, trig_k, *, n_heads, causal):
    """x:(B,Tq,C), c:(B,Tk,C), mq:(B,Tq,1), mk_row:(B,1,Tk) -> (B,Tq,C)."""
    B, Tq, C = x.shape
    Tk = c.shape[1]
    Dk = C // n_heads
    kernel = functools.partial(
        attn_block_kernel, n_heads=n_heads, scale=1.0 / math.sqrt(Dk),
        causal=causal, fuse_qkv=causal, eps=_LN_EPS)
    per_b = lambda b: (b, 0, 0)
    w2d = lambda b: (0, 0)
    w3d = lambda b: (0, 0, 0)
    return pl.pallas_call(
        kernel,
        out_shape=jax.ShapeDtypeStruct((B, Tq, C), jnp.float32),
        grid=(B,),
        in_specs=[
            pl.BlockSpec((1, Tq, C), per_b),            # x (query / residual)
            pl.BlockSpec((1, Tk, C), per_b),            # c (context)
            pl.BlockSpec((1, Tq, 1), per_b),            # query seq mask
            pl.BlockSpec((1, 1, Tk), per_b),            # key seq mask (row layout)
            pl.BlockSpec((C, 3 * C), w2d),              # fused Wq|Wk|Wv (bf16)
            pl.BlockSpec((1, 3 * C), w2d),              # fused bias (f32)
            pl.BlockSpec((C, C), w2d),                  # Wo (bf16)
            pl.BlockSpec((1, C), w2d),                  # bo
            pl.BlockSpec((1, C), w2d),                  # LN gamma
            pl.BlockSpec((1, C), w2d),                  # LN beta
            pl.BlockSpec((3, Tq, C), w3d),              # RoPE trig (query side)
            pl.BlockSpec((3, Tk, C), w3d),              # RoPE trig (key side)
        ],
        out_specs=pl.BlockSpec((1, Tq, C), per_b),
        compiler_params=pltpu.CompilerParams(
            dimension_semantics=("parallel",),
            vmem_limit_bytes=_VMEM_LIMIT),
    )(x, c, mq, mk_row, wqkv, bqkv, wo, bo, ln_g, ln_b, trig_q, trig_k)


def ffn_block(x, mask_x, w1, b1, w2, b2, ln_g, ln_b, *, t_tile=512):
    """Fused FFN + residual + LN, tiled over the sequence axis."""
    B, T, C = x.shape
    F = w1.shape[1]
    tt = T if T <= t_tile else t_tile
    return pl.pallas_call(
        functools.partial(ffn_block_kernel, eps=_LN_EPS),
        out_shape=jax.ShapeDtypeStruct((B, T, C), jnp.float32),
        grid=(B, pl.cdiv(T, tt)),
        in_specs=[
            pl.BlockSpec((1, tt, C), lambda b, t: (b, t, 0)),
            pl.BlockSpec((1, tt, 1), lambda b, t: (b, t, 0)),
            pl.BlockSpec((C, F), lambda b, t: (0, 0)),
            pl.BlockSpec((1, F), lambda b, t: (0, 0)),
            pl.BlockSpec((F, C), lambda b, t: (0, 0)),
            pl.BlockSpec((1, C), lambda b, t: (0, 0)),
            pl.BlockSpec((1, C), lambda b, t: (0, 0)),
            pl.BlockSpec((1, C), lambda b, t: (0, 0)),
        ],
        out_specs=pl.BlockSpec((1, tt, C), lambda b, t: (b, t, 0)),
        compiler_params=pltpu.CompilerParams(
            dimension_semantics=("parallel", "parallel"),
            vmem_limit_bytes=_VMEM_LIMIT),
    )(x, mask_x, w1, b1, w2, b2, ln_g, ln_b)


# --------------------------- glue / parameters --------------------------------

def rope_cache(T, d, base=10000.0):
    """Per-head (T, d) cos/sin tables (reference path)."""
    theta = 1.0 / (base ** (jnp.arange(0, d, 2, dtype=jnp.float32) / d))
    it = jnp.outer(jnp.arange(T, dtype=jnp.float32), theta)   # (T, d/2)
    it2 = jnp.concatenate([it, it], axis=-1)                   # (T, d)
    return jnp.cos(it2), jnp.sin(it2)


def rope_trig(T, n_heads, Dk, base=10000.0):
    """Full-width (3, T, C) trig tables [cos, -sin(shift-left), +sin(shift-right)]."""
    dr = Dk // 2
    half = dr // 2
    theta = 1.0 / (base ** (jnp.arange(0, dr, 2, dtype=jnp.float32) / dr))   # (half,)
    ang = jnp.outer(jnp.arange(T, dtype=jnp.float32), theta)                 # (T, half)
    cos2 = jnp.cos(jnp.concatenate([ang, ang], axis=-1))                     # (T, dr)
    sin2 = jnp.sin(jnp.concatenate([ang, ang], axis=-1))
    zpass = jnp.zeros((T, Dk - dr), jnp.float32)
    cos_h = jnp.concatenate([cos2, jnp.ones((T, Dk - dr), jnp.float32)], axis=-1)
    sinm_h = jnp.concatenate(
        [-sin2[:, :half], jnp.zeros((T, dr - half), jnp.float32), zpass], axis=-1)
    sinp_h = jnp.concatenate(
        [jnp.zeros((T, half), jnp.float32), sin2[:, half:], zpass], axis=-1)
    trig = jnp.stack([cos_h, sinm_h, sinp_h], axis=0)          # (3, T, Dk)
    return jnp.tile(trig, (1, 1, n_heads))                     # (3, T, C)


def init_params(key, C, F, n_layers):
    def dense(k, cin, cout):
        k1, k2 = jax.random.split(k)
        scale = math.sqrt(2.0 / (cin + cout))
        w = jax.random.normal(k1, (cin, cout), jnp.float32) * scale
        b = jax.random.normal(k2, (cout,), jnp.float32) * 0.01
        return w, b

    layers = []
    for lk in jax.random.split(key, n_layers):
        ks = jax.random.split(lk, 14)
        sa, ca, ff = {}, {}, {}
        sa['wq'], sa['bq'] = dense(ks[0], C, C)
        sa['wk'], sa['bk'] = dense(ks[1], C, C)
        sa['wv'], sa['bv'] = dense(ks[2], C, C)
        sa['wo'], sa['bo'] = dense(ks[3], C, C)
        ca['wq'], ca['bq'] = dense(ks[4], C, C)
        ca['wk'], ca['bk'] = dense(ks[5], C, C)
        ca['wv'], ca['bv'] = dense(ks[6], C, C)
        ca['wo'], ca['bo'] = dense(ks[7], C, C)
        ff['w1'], ff['b1'] = dense(ks[8], C, F)
        ff['w2'], ff['b2'] = dense(ks[9], F, C)
        layers.append({
            'sa': sa, 'ca': ca, 'ffn': ff,
            'ln0_g': 1.0 + 0.05 * jax.random.normal(ks[10], (C,), jnp.float32),
            'ln0_b': 0.05 * jax.random.normal(ks[11], (C,), jnp.float32),
            'ln1_g': 1.0 + 0.05 * jax.random.normal(ks[12], (C,), jnp.float32),
            'ln1_b': 0.05 * jax.random.normal(ks[13], (C,), jnp.float32),
            'ln2_g': jnp.ones((C,), jnp.float32),
            'ln2_b': jnp.zeros((C,), jnp.float32),
        })
    return {'layers': layers}


def prepare_params(params):
    """Fuse QKV weights, pre-cast matmul weights to bf16, reshape biases/LN to 2D."""
    def attn_pack(p):
        wqkv = jnp.concatenate([p['wq'], p['wk'], p['wv']], axis=1)
        bqkv = jnp.concatenate([p['bq'], p['bk'], p['bv']], axis=0)
        return dict(wqkv=wqkv.astype(jnp.bfloat16), bqkv=bqkv.reshape(1, -1),
                    wo=p['wo'].astype(jnp.bfloat16), bo=p['bo'].reshape(1, -1))

    packed = []
    for lp in params['layers']:
        ff = lp['ffn']
        packed.append(dict(
            sa=attn_pack(lp['sa']), ca=attn_pack(lp['ca']),
            w1=ff['w1'].astype(jnp.bfloat16), b1=ff['b1'].reshape(1, -1),
            w2=ff['w2'].astype(jnp.bfloat16), b2=ff['b2'].reshape(1, -1),
            ln0_g=lp['ln0_g'].reshape(1, -1), ln0_b=lp['ln0_b'].reshape(1, -1),
            ln1_g=lp['ln1_g'].reshape(1, -1), ln1_b=lp['ln1_b'].reshape(1, -1),
            ln2_g=lp['ln2_g'].reshape(1, -1), ln2_b=lp['ln2_b'].reshape(1, -1)))
    return packed


def decoder_forward(x, mask_x, h, mask_h, params, n_heads):
    """x:(B,Tx,C), mask_x:(B,Tx,1), h:(B,Th,C), mask_h:(B,Th,1) -> (B,Tx,C)."""
    B, Tx, C = x.shape
    Th = h.shape[1]
    Dk = C // n_heads
    assert C % n_heads == 0 and Dk % 4 == 0
    trig_x = rope_trig(Tx, n_heads, Dk)
    trig_h = rope_trig(Th, n_heads, Dk)
    mx_row = jnp.transpose(mask_x, (0, 2, 1))       # (B,1,Tx) (unused by causal attn)
    mh_row = jnp.transpose(mask_h, (0, 2, 1))       # (B,1,Th)
    packed = prepare_params(params)

    x = x * mask_x
    for lp in packed:
        sa, ca = lp['sa'], lp['ca']
        # --- causal self attention (QKV fused into one matmul) ---
        x = attn_block(x, x, mask_x, mx_row, sa['wqkv'], sa['bqkv'], sa['wo'], sa['bo'],
                       lp['ln0_g'], lp['ln0_b'], trig_x, trig_x,
                       n_heads=n_heads, causal=True)
        # --- enc-dec attention (keep-mask built in-kernel from seq masks) ---
        x = attn_block(x, h, mask_x, mh_row, ca['wqkv'], ca['bqkv'], ca['wo'], ca['bo'],
                       lp['ln1_g'], lp['ln1_b'], trig_x, trig_h,
                       n_heads=n_heads, causal=False)
        # --- FFN + residual + LN ---
        x = ffn_block(x, mask_x, lp['w1'], lp['b1'], lp['w2'], lp['b2'],
                      lp['ln2_g'], lp['ln2_b'])
    return x * mask_x


# ----------------------- reference (mirrors bf16 MXU inputs) -------------------
# Faithful to the PyTorch math (masks, RoPE, LN eps=1e-4) but casts matmul inputs
# to bf16 with f32 accumulation, matching the kernel's MXU precision.

def _bf16_dot(a, w, b=None):
    out = jnp.dot(a.astype(jnp.bfloat16), w.astype(jnp.bfloat16),
                  preferred_element_type=jnp.float32)
    return out if b is None else out + b


def _ref_rope(x, cos, sin):  # x: (B,H,T,Dk)
    dr = cos.shape[-1]
    half = dr // 2
    xr, xp = x[..., :dr], x[..., dr:]
    neg = jnp.concatenate([-xr[..., half:], xr[..., :half]], axis=-1)
    return jnp.concatenate([xr * cos + neg * sin, xp], axis=-1)


def _ref_mha(xq, xc, mask, p, H, cos_q, sin_q, cos_k, sin_k):
    B, Tq, C = xq.shape
    Tk = xc.shape[1]
    Dk = C // H
    q = _bf16_dot(xq, p['wq'], p['bq'])
    k = _bf16_dot(xc, p['wk'], p['bk'])
    v = _bf16_dot(xc, p['wv'], p['bv'])
    q = q.reshape(B, Tq, H, Dk).transpose(0, 2, 1, 3)
    k = k.reshape(B, Tk, H, Dk).transpose(0, 2, 1, 3)
    v = v.reshape(B, Tk, H, Dk).transpose(0, 2, 1, 3)
    q = _ref_rope(q, cos_q, sin_q)
    k = _ref_rope(k, cos_k, sin_k)
    scores = jnp.einsum('bhqd,bhkd->bhqk', q.astype(jnp.bfloat16),
                        k.astype(jnp.bfloat16),
                        preferred_element_type=jnp.float32) / math.sqrt(Dk)
    scores = jnp.where(mask[:, None] == 0.0, -1e4, scores)
    pa = jax.nn.softmax(scores, axis=-1)
    out = jnp.einsum('bhqk,bhkd->bhqd', pa.astype(jnp.bfloat16),
                     v.astype(jnp.bfloat16), preferred_element_type=jnp.float32)
    out = out.transpose(0, 2, 1, 3).reshape(B, Tq, C)
    return _bf16_dot(out, p['wo'], p['bo'])


def _ref_ln(z, g, b, eps=_LN_EPS):
    m = jnp.mean(z, -1, keepdims=True)
    v = jnp.mean((z - m) ** 2, -1, keepdims=True)
    return (z - m) * jax.lax.rsqrt(v + eps) * g + b


def ref_decoder(x, mask_x, h, mask_h, params, n_heads):
    B, Tx, C = x.shape
    Th = h.shape[1]
    Dk = C // n_heads
    dr = Dk // 2
    cos_x, sin_x = rope_cache(Tx, dr)
    cos_h, sin_h = rope_cache(Th, dr)
    self_mask = jnp.broadcast_to(
        jnp.tril(jnp.ones((Tx, Tx), jnp.float32))[None], (B, Tx, Tx))
    encdec_mask = mask_x[:, :, 0][:, :, None] * mask_h[:, :, 0][:, None, :]
    x = x * mask_x
    for lp in params['layers']:
        y = _ref_mha(x, x, self_mask, lp['sa'], n_heads, cos_x, sin_x, cos_x, sin_x)
        x = _ref_ln(x + y, lp['ln0_g'], lp['ln0_b'])
        y = _ref_mha(x, h, encdec_mask, lp['ca'], n_heads, cos_x, sin_x, cos_h, sin_h)
        x = _ref_ln(x + y, lp['ln1_g'], lp['ln1_b'])
        ff = lp['ffn']
        t = jnp.maximum(_bf16_dot(x * mask_x, ff['w1'], ff['b1']), 0.0) * mask_x
        y = _bf16_dot(t, ff['w2'], ff['b2']) * mask_x
        x = _ref_ln(x + y, lp['ln2_g'], lp['ln2_b'])
    return x * mask_x


# ------------------------------------ main -------------------------------------

if __name__ == "__main__":
    B, Tx, Th = 2, 8, 12
    C, F = 32, 64          # hidden_channels, filter_channels
    n_heads, n_layers = 2, 2

    key = jax.random.PRNGKey(0)
    kx, kh, kp = jax.random.split(key, 3)
    x = jax.random.normal(kx, (B, Tx, C), jnp.float32)
    h = jax.random.normal(kh, (B, Th, C), jnp.float32)

    x_lens = jnp.array([8, 6])
    h_lens = jnp.array([12, 9])
    mask_x = (jnp.arange(Tx)[None, :] < x_lens[:, None]).astype(jnp.float32)[..., None]
    mask_h = (jnp.arange(Th)[None, :] < h_lens[:, None]).astype(jnp.float32)[..., None]

    params = init_params(kp, C, F, n_layers)

    fwd = jax.jit(functools.partial(decoder_forward, n_heads=n_heads))
    out = jax.block_until_ready(fwd(x, mask_x, h, mask_h, params))

    ref = ref_decoder(x, mask_x, h, mask_h, params, n_heads)
    assert out.shape == (B, Tx, C)
    assert bool(jnp.all(jnp.isfinite(out)))
    err = float(jnp.max(jnp.abs(out - ref)))
    assert err < 2e-2, err
    print("KERNEL_OK")
</pallas_src>

<mosaic_0001>
module attributes {stable_mosaic.version = 11 : i64} {
  func.func @attn_block_kernel(%arg0: i32, %arg1: memref<1x8x32xf32, #tpu.memory_space<vmem>>, %arg2: memref<1x8x32xf32, #tpu.memory_space<vmem>>, %arg3: memref<1x8x1xf32, #tpu.memory_space<vmem>>, %arg4: memref<1x1x8xf32, #tpu.memory_space<vmem>>, %arg5: memref<32x96xbf16, #tpu.memory_space<vmem>>, %arg6: memref<1x96xf32, #tpu.memory_space<vmem>>, %arg7: memref<32x32xbf16, #tpu.memory_space<vmem>>, %arg8: memref<1x32xf32, #tpu.memory_space<vmem>>, %arg9: memref<1x32xf32, #tpu.memory_space<vmem>>, %arg10: memref<1x32xf32, #tpu.memory_space<vmem>>, %arg11: memref<3x8x32xf32, #tpu.memory_space<vmem>>, %arg12: memref<3x8x32xf32, #tpu.memory_space<vmem>>, %arg13: memref<1x8x32xf32, #tpu.memory_space<vmem>>) attributes {dimension_semantics = [#tpu.dimension_semantics<parallel>], iteration_bounds = array<i64: 2>, scalar_prefetch = 0 : i64, scratch_operands = 0 : i64, tpu.core_type = #tpu.core_type<tc>, window_params = [{transform_indices = @transform_0, window_bounds = array<i64: 1, 8, 32>}, {transform_indices = @transform_1, window_bounds = array<i64: 1, 8, 32>}, {transform_indices = @transform_2, window_bounds = array<i64: 1, 8, 1>}, {transform_indices = @transform_3, window_bounds = array<i64: 1, 1, 8>}, {pipeline_mode = #tpu.pipeline_mode<synchronous>, transform_indices = @transform_4, window_bounds = array<i64: 32, 96>}, {pipeline_mode = #tpu.pipeline_mode<synchronous>, transform_indices = @transform_5, window_bounds = array<i64: 1, 96>}, {pipeline_mode = #tpu.pipeline_mode<synchronous>, transform_indices = @transform_6, window_bounds = array<i64: 32, 32>}, {pipeline_mode = #tpu.pipeline_mode<synchronous>, transform_indices = @transform_7, window_bounds = array<i64: 1, 32>}, {pipeline_mode = #tpu.pipeline_mode<synchronous>, transform_indices = @transform_8, window_bounds = array<i64: 1, 32>}, {pipeline_mode = #tpu.pipeline_mode<synchronous>, transform_indices = @transform_9, window_bounds = array<i64: 1, 32>}, {pipeline_mode = #tpu.pipeline_mode<synchronous>, transform_indices = @transform_10, window_bounds = array<i64: 3, 8, 32>}, {pipeline_mode = #tpu.pipeline_mode<synchronous>, transform_indices = @transform_11, window_bounds = array<i64: 3, 8, 32>}, {transform_indices = @transform_12, window_bounds = array<i64: 1, 8, 32>}]} {
    %c0 = arith.constant 0 : index
    %c0_0 = arith.constant 0 : index
    %c0_1 = arith.constant 0 : index
    %0 = vector.load %arg1[%c0, %c0_0, %c0_1] : memref<1x8x32xf32, #tpu.memory_space<vmem>>, vector<1x8x32xf32>
    %1 = vector.shape_cast %0 : vector<1x8x32xf32> to vector<8x32xf32>
    %2 = arith.truncf %1 : vector<8x32xf32> to vector<8x32xbf16>
    %c0_2 = arith.constant 0 : index
    %c0_3 = arith.constant 0 : index
    %3 = vector.load %arg5[%c0_2, %c0_3] : memref<32x96xbf16, #tpu.memory_space<vmem>>, vector<32x96xbf16>
    %cst = arith.constant dense<0.000000e+00> : vector<8x96xf32>
    %4 = tpu.matmul %2, %3, %cst {dimension_numbers = #tpu.dot_dimension_numbers<[1], [0], [0], [1], [0, 0, 1, 1], [], []>} : vector<8x32xbf16>, vector<32x96xbf16>, vector<8x96xf32> -> vector<8x96xf32>
    %c0_4 = arith.constant 0 : index
    %c0_5 = arith.constant 0 : index
    %5 = vector.load %arg6[%c0_4, %c0_5] : memref<1x96xf32, #tpu.memory_space<vmem>>, vector<1x96xf32>
    %6 = vector.broadcast %5 : vector<1x96xf32> to vector<8x96xf32>
    %7 = arith.addf %4, %6 : vector<8x96xf32>
    %8 = vector.extract_strided_slice %7 {offsets = [0, 0], sizes = [8, 32], strides = [1, 1]} : vector<8x96xf32> to vector<8x32xf32>
    %9 = vector.extract_strided_slice %7 {offsets = [0, 32], sizes = [8, 32], strides = [1, 1]} : vector<8x96xf32> to vector<8x32xf32>
    %10 = vector.extract_strided_slice %7 {offsets = [0, 64], sizes = [8, 32], strides = [1, 1]} : vector<8x96xf32> to vector<8x32xf32>
    %c0_6 = arith.constant 0 : index
    %c0_7 = arith.constant 0 : index
    %c0_8 = arith.constant 0 : index
    %11 = vector.load %arg11[%c0_6, %c0_7, %c0_8] : memref<3x8x32xf32, #tpu.memory_space<vmem>>, vector<1x8x32xf32>
    %12 = vector.shape_cast %11 : vector<1x8x32xf32> to vector<8x32xf32>
    %c1 = arith.constant 1 : index
    %c0_9 = arith.constant 0 : index
    %c0_10 = arith.constant 0 : index
    %13 = vector.load %arg11[%c1, %c0_9, %c0_10] : memref<3x8x32xf32, #tpu.memory_space<vmem>>, vector<1x8x32xf32>
    %14 = vector.shape_cast %13 : vector<1x8x32xf32> to vector<8x32xf32>
    %c2 = arith.constant 2 : index
    %c0_11 = arith.constant 0 : index
    %c0_12 = arith.constant 0 : index
    %15 = vector.load %arg11[%c2, %c0_11, %c0_12] : memref<3x8x32xf32, #tpu.memory_space<vmem>>, vector<1x8x32xf32>
    %16 = vector.shape_cast %15 : vector<1x8x32xf32> to vector<8x32xf32>
    %17 = vector.extract_strided_slice %8 {offsets = [0, 4], sizes = [8, 28], strides = [1, 1]} : vector<8x32xf32> to vector<8x28xf32>
    %18 = vector.extract_strided_slice %8 {offsets = [0, 0], sizes = [8, 4], strides = [1, 1]} : vector<8x32xf32> to vector<8x4xf32>
    %19 = tpu.concatenate %17, %18 in 1 : vector<8x28xf32>, vector<8x4xf32> -> vector<8x32xf32>
    %20 = vector.extract_strided_slice %8 {offsets = [0, 28], sizes = [8, 4], strides = [1, 1]} : vector<8x32xf32> to vector<8x4xf32>
    %21 = vector.extract_strided_slice %8 {offsets = [0, 0], sizes = [8, 28], strides = [1, 1]} : vector<8x32xf32> to vector<8x28xf32>
    %22 = tpu.concatenate %20, %21 in 1 : vector<8x4xf32>, vector<8x28xf32> -> vector<8x32xf32>
    %23 = arith.mulf %8, %12 : vector<8x32xf32>
    %24 = arith.mulf %19, %14 : vector<8x32xf32>
    %25 = arith.addf %23, %24 : vector<8x32xf32>
    %26 = arith.mulf %22, %16 : vector<8x32xf32>
    %27 = arith.addf %25, %26 : vector<8x32xf32>
    %c0_13 = arith.constant 0 : index
    %c0_14 = arith.constant 0 : index
    %c0_15 = arith.constant 0 : index
    %28 = vector.load %arg12[%c0_13, %c0_14, %c0_15] : memref<3x8x32xf32, #tpu.memory_space<vmem>>, vector<1x8x32xf32>
    %29 = vector.shape_cast %28 : vector<1x8x32xf32> to vector<8x32xf32>
    %c1_16 = arith.constant 1 : index
    %c0_17 = arith.constant 0 : index
    %c0_18 = arith.constant 0 : index
    %30 = vector.load %arg12[%c1_16, %c0_17, %c0_18] : memref<3x8x32xf32, #tpu.memory_space<vmem>>, vector<1x8x32xf32>
    %31 = vector.shape_cast %30 : vector<1x8x32xf32> to vector<8x32xf32>
    %c2_19 = arith.constant 2 : index
    %c0_20 = arith.constant 0 : index
    %c0_21 = arith.constant 0 : index
    %32 = vector.load %arg12[%c2_19, %c0_20, %c0_21] : memref<3x8x32xf32, #tpu.memory_space<vmem>>, vector<1x8x32xf32>
    %33 = vector.shape_cast %32 : vector<1x8x32xf32> to vector<8x32xf32>
    %34 = vector.extract_strided_slice %9 {offsets = [0, 4], sizes = [8, 28], strides = [1, 1]} : vector<8x32xf32> to vector<8x28xf32>
    %35 = vector.extract_strided_slice %9 {offsets = [0, 0], sizes = [8, 4], strides = [1, 1]} : vector<8x32xf32> to vector<8x4xf32>
    %36 = tpu.concatenate %34, %35 in 1 : vector<8x28xf32>, vector<8x4xf32> -> vector<8x32xf32>
    %37 = vector.extract_strided_slice %9 {offsets = [0, 28], sizes = [8, 4], strides = [1, 1]} : vector<8x32xf32> to vector<8x4xf32>
    %38 = vector.extract_strided_slice %9 {offsets = [0, 0], sizes = [8, 28], strides = [1, 1]} : vector<8x32xf32> to vector<8x28xf32>
    %39 = tpu.concatenate %37, %38 in 1 : vector<8x4xf32>, vector<8x28xf32> -> vector<8x32xf32>
    %40 = arith.mulf %9, %29 : vector<8x32xf32>
    %41 = arith.mulf %36, %31 : vector<8x32xf32>
    %42 = arith.addf %40, %41 : vector<8x32xf32>
    %43 = arith.mulf %39, %33 : vector<8x32xf32>
    %44 = arith.addf %42, %43 : vector<8x32xf32>
    %45 = tpu.iota {dimensions = array<i32: 0>} : vector<8x8xi32>
    %46 = tpu.iota {dimensions = array<i32: 1>} : vector<8x8xi32>
    %47 = arith.cmpi sge, %45, %46 : vector<8x8xi32>
    %cst_22 = arith.constant 2.500000e-01 : f32
    %48 = vector.broadcast %cst_22 : f32 to vector<8x32xf32>
    %49 = arith.mulf %27, %48 : vector<8x32xf32>
    %50 = arith.truncf %49 : vector<8x32xf32> to vector<8x32xbf16>
    %51 = arith.truncf %44 : vector<8x32xf32> to vector<8x32xbf16>
    %52 = arith.truncf %10 : vector<8x32xf32> to vector<8x32xbf16>
    %53 = vector.extract_strided_slice %50 {offsets = [0, 0], sizes = [8, 16], strides = [1, 1]} : vector<8x32xbf16> to vector<8x16xbf16>
    %54 = vector.extract_strided_slice %51 {offsets = [0, 0], sizes = [8, 16], strides = [1, 1]} : vector<8x32xbf16> to vector<8x16xbf16>
    %cst_23 = arith.constant dense<0.000000e+00> : vector<8x8xf32>
    %55 = tpu.matmul %53, %54, %cst_23 {dimension_numbers = #tpu.dot_dimension_numbers<[1], [1], [0], [0], [0, 0, 1, 0], [], []>} : vector<8x16xbf16>, vector<8x16xbf16>, vector<8x8xf32> -> vector<8x8xf32>
    %cst_24 = arith.constant -1.000000e+04 : f32
    %56 = vector.broadcast %cst_24 : f32 to vector<8x8xf32>
    %57 = arith.select %47, %55, %56 : vector<8x8xi1>, vector<8x8xf32>
    %cst_25 = arith.constant dense<0xFF800000> : vector<8xf32>
    %58 = vector.multi_reduction <maximumf>, %57, %cst_25 [1] : vector<8x8xf32> to vector<8xf32>
    %59 = vector.shape_cast %58 : vector<8xf32> to vector<8x1xf32>
    %60 = vector.broadcast %59 : vector<8x1xf32> to vector<8x8xf32>
    %61 = arith.subf %57, %60 : vector<8x8xf32>
    %62 = math.exp %61 : vector<8x8xf32>
    %cst_26 = arith.constant dense<0.000000e+00> : vector<8xf32>
    %63 = vector.multi_reduction <add>, %62, %cst_26 [1] : vector<8x8xf32> to vector<8xf32>
    %64 = vector.shape_cast %63 : vector<8xf32> to vector<8x1xf32>
    %65 = tpu.reciprocal %64 {approx = true} : vector<8x1xf32> -> vector<8x1xf32>
    %66 = arith.mulf %64, %65 : vector<8x1xf32>
    %cst_27 = arith.constant 2.000000e+00 : f32
    %67 = vector.broadcast %cst_27 : f32 to vector<8x1xf32>
    %68 = arith.subf %67, %66 : vector<8x1xf32>
    %69 = arith.mulf %65, %68 : vector<8x1xf32>
    %70 = vector.broadcast %69 : vector<8x1xf32> to vector<8x8xf32>
    %71 = arith.mulf %62, %70 : vector<8x8xf32>
    %72 = arith.truncf %71 : vector<8x8xf32> to vector<8x8xbf16>
    %73 = vector.extract_strided_slice %52 {offsets = [0, 0], sizes = [8, 16], strides = [1, 1]} : vector<8x32xbf16> to vector<8x16xbf16>
    %cst_28 = arith.constant dense<0.000000e+00> : vector<8x16xf32>
    %74 = tpu.matmul %72, %73, %cst_28 {dimension_numbers = #tpu.dot_dimension_numbers<[1], [0], [0], [1], [0, 0, 1, 1], [], []>} : vector<8x8xbf16>, vector<8x16xbf16>, vector<8x16xf32> -> vector<8x16xf32>
    %75 = vector.extract_strided_slice %50 {offsets = [0, 16], sizes = [8, 16], strides = [1, 1]} : vector<8x32xbf16> to vector<8x16xbf16>
    %76 = vector.extract_strided_slice %51 {offsets = [0, 16], sizes = [8, 16], strides = [1, 1]} : vector<8x32xbf16> to vector<8x16xbf16>
    %cst_29 = arith.constant dense<0.000000e+00> : vector<8x8xf32>
    %77 = tpu.matmul %75, %76, %cst_29 {dimension_numbers = #tpu.dot_dimension_numbers<[1], [1], [0], [0], [0, 0, 1, 0], [], []>} : vector<8x16xbf16>, vector<8x16xbf16>, vector<8x8xf32> -> vector<8x8xf32>
    %cst_30 = arith.constant -1.000000e+04 : f32
    %78 = vector.broadcast %cst_30 : f32 to vector<8x8xf32>
    %79 = arith.select %47, %77, %78 : vector<8x8xi1>, vector<8x8xf32>
    %cst_31 = arith.constant dense<0xFF800000> : vector<8xf32>
    %80 = vector.multi_reduction <maximumf>, %79, %cst_31 [1] : vector<8x8xf32> to vector<8xf32>
    %81 = vector.shape_cast %80 : vector<8xf32> to vector<8x1xf32>
    %82 = vector.broadcast %81 : vector<8x1xf32> to vector<8x8xf32>
    %83 = arith.subf %79, %82 : vector<8x8xf32>
    %84 = math.exp %83 : vector<8x8xf32>
    %cst_32 = arith.constant dense<0.000000e+00> : vector<8xf32>
    %85 = vector.multi_reduction <add>, %84, %cst_32 [1] : vector<8x8xf32> to vector<8xf32>
    %86 = vector.shape_cast %85 : vector<8xf32> to vector<8x1xf32>
    %87 = tpu.reciprocal %86 {approx = true} : vector<8x1xf32> -> vector<8x1xf32>
    %88 = arith.mulf %86, %87 : vector<8x1xf32>
    %cst_33 = arith.constant 2.000000e+00 : f32
    %89 = vector.broadcast %cst_33 : f32 to vector<8x1xf32>
    %90 = arith.subf %89, %88 : vector<8x1xf32>
    %91 = arith.mulf %87, %90 : vector<8x1xf32>
    %92 = vector.broadcast %91 : vector<8x1xf32> to vector<8x8xf32>
    %93 = arith.mulf %84, %92 : vector<8x8xf32>
    %94 = arith.truncf %93 : vector<8x8xf32> to vector<8x8xbf16>
    %95 = vector.extract_strided_slice %52 {offsets = [0, 16], sizes = [8, 16], strides = [1, 1]} : vector<8x32xbf16> to vector<8x16xbf16>
    %cst_34 = arith.constant dense<0.000000e+00> : vector<8x16xf32>
    %96 = tpu.matmul %94, %95, %cst_34 {dimension_numbers = #tpu.dot_dimension_numbers<[1], [0], [0], [1], [0, 0, 1, 1], [], []>} : vector<8x8xbf16>, vector<8x16xbf16>, vector<8x16xf32> -> vector<8x16xf32>
    %97 = tpu.concatenate %74, %96 in 1 : vector<8x16xf32>, vector<8x16xf32> -> vector<8x32xf32>
    %98 = arith.truncf %97 : vector<8x32xf32> to vector<8x32xbf16>
    %c0_35 = arith.constant 0 : index
    %c0_36 = arith.constant 0 : index
    %99 = vector.load %arg7[%c0_35, %c0_36] : memref<32x32xbf16, #tpu.memory_space<vmem>>, vector<32x32xbf16>
    %cst_37 = arith.constant dense<0.000000e+00> : vector<8x32xf32>
    %100 = tpu.matmul %98, %99, %cst_37 {dimension_numbers = #tpu.dot_dimension_numbers<[1], [0], [0], [1], [0, 0, 1, 1], [], []>} : vector<8x32xbf16>, vector<32x32xbf16>, vector<8x32xf32> -> vector<8x32xf32>
    %c0_38 = arith.constant 0 : index
    %c0_39 = arith.constant 0 : index
    %101 = vector.load %arg8[%c0_38, %c0_39] : memref<1x32xf32, #tpu.memory_space<vmem>>, vector<1x32xf32>
    %102 = vector.broadcast %101 : vector<1x32xf32> to vector<8x32xf32>
    %103 = arith.addf %100, %102 : vector<8x32xf32>
    %104 = arith.addf %1, %103 : vector<8x32xf32>
    %cst_40 = arith.constant dense<0.000000e+00> : vector<8xf32>
    %105 = vector.multi_reduction <add>, %104, %cst_40 [1] : vector<8x32xf32> to vector<8xf32>
    %106 = vector.shape_cast %105 : vector<8xf32> to vector<8x1xf32>
    %cst_41 = arith.constant 3.200000e+01 : f32
    %107 = vector.broadcast %cst_41 : f32 to vector<8x1xf32>
    %108 = arith.divf %106, %107 : vector<8x1xf32>
    %109 = vector.broadcast %108 : vector<8x1xf32> to vector<8x32xf32>
    %110 = arith.subf %104, %109 : vector<8x32xf32>
    %111 = arith.mulf %110, %110 : vector<8x32xf32>
    %cst_42 = arith.constant dense<0.000000e+00> : vector<8xf32>
    %112 = vector.multi_reduction <add>, %111, %cst_42 [1] : vector<8x32xf32> to vector<8xf32>
    %113 = vector.shape_cast %112 : vector<8xf32> to vector<8x1xf32>
    %cst_43 = arith.constant 3.200000e+01 : f32
    %114 = vector.broadcast %cst_43 : f32 to vector<8x1xf32>
    %115 = arith.divf %113, %114 : vector<8x1xf32>
    %116 = vector.broadcast %108 : vector<8x1xf32> to vector<8x32xf32>
    %117 = arith.subf %104, %116 : vector<8x32xf32>
    %cst_44 = arith.constant 9.99999974E-5 : f32
    %118 = vector.broadcast %cst_44 : f32 to vector<8x1xf32>
    %119 = arith.addf %115, %118 : vector<8x1xf32>
    %120 = math.rsqrt %119 : vector<8x1xf32>
    %121 = vector.broadcast %120 : vector<8x1xf32> to vector<8x32xf32>
    %122 = arith.mulf %117, %121 : vector<8x32xf32>
    %c0_45 = arith.constant 0 : index
    %c0_46 = arith.constant 0 : index
    %123 = vector.load %arg9[%c0_45, %c0_46] : memref<1x32xf32, #tpu.memory_space<vmem>>, vector<1x32xf32>
    %124 = vector.broadcast %123 : vector<1x32xf32> to vector<8x32xf32>
    %125 = arith.mulf %122, %124 : vector<8x32xf32>
    %c0_47 = arith.constant 0 : index
    %c0_48 = arith.constant 0 : index
    %126 = vector.load %arg10[%c0_47, %c0_48] : memref<1x32xf32, #tpu.memory_space<vmem>>, vector<1x32xf32>
    %127 = vector.broadcast %126 : vector<1x32xf32> to vector<8x32xf32>
    %128 = arith.addf %125, %127 : vector<8x32xf32>
    %c0_49 = arith.constant 0 : index
    %c0_50 = arith.constant 0 : index
    %c0_51 = arith.constant 0 : index
    %129 = vector.load %arg13[%c0_49, %c0_50, %c0_51] : memref<1x8x32xf32, #tpu.memory_space<vmem>>, vector<1x8x32xf32>
    %130 = vector.shape_cast %129 : vector<1x8x32xf32> to vector<8x32xf32>
    %131 = vector.shape_cast %128 : vector<8x32xf32> to vector<1x8x32xf32>
    tpu.vector_store %arg13[%c0_49, %c0_50, %c0_51], %131 {strides = array<i32>} : memref<1x8x32xf32, #tpu.memory_space<vmem>>, vector<1x8x32xf32>,
    return
  }
  func.func @transform_0(%arg0: i32) -> (i32, i32, i32) {
    %c0_i32 = arith.constant 0 : i32
    %c0_i32_0 = arith.constant 0 : i32
    %c0_i32_1 = arith.constant 0 : i32
    return %arg0, %c0_i32, %c0_i32_0 : i32, i32, i32
  }
  func.func @transform_1(%arg0: i32) -> (i32, i32, i32) {
    %c0_i32 = arith.constant 0 : i32
    %c0_i32_0 = arith.constant 0 : i32
    %c0_i32_1 = arith.constant 0 : i32
    return %arg0, %c0_i32, %c0_i32_0 : i32, i32, i32
  }
  func.func @transform_2(%arg0: i32) -> (i32, i32, i32) {
    %c0_i32 = arith.constant 0 : i32
    %c0_i32_0 = arith.constant 0 : i32
    %c0_i32_1 = arith.constant 0 : i32
    return %arg0, %c0_i32, %c0_i32_0 : i32, i32, i32
  }
  func.func @transform_3(%arg0: i32) -> (i32, i32, i32) {
    %c0_i32 = arith.constant 0 : i32
    %c0_i32_0 = arith.constant 0 : i32
    %c0_i32_1 = arith.constant 0 : i32
    return %arg0, %c0_i32, %c0_i32_0 : i32, i32, i32
  }
  func.func @transform_4(%arg0: i32) -> (i32, i32) {
    %c0_i32 = arith.constant 0 : i32
    %c0_i32_0 = arith.constant 0 : i32
    %c0_i32_1 = arith.constant 0 : i32
    return %c0_i32, %c0_i32_0 : i32, i32
  }
  func.func @transform_5(%arg0: i32) -> (i32, i32) {
    %c0_i32 = arith.constant 0 : i32
    %c0_i32_0 = arith.constant 0 : i32
    %c0_i32_1 = arith.constant 0 : i32
    return %c0_i32, %c0_i32_0 : i32, i32
  }
  func.func @transform_6(%arg0: i32) -> (i32, i32) {
    %c0_i32 = arith.constant 0 : i32
    %c0_i32_0 = arith.constant 0 : i32
    %c0_i32_1 = arith.constant 0 : i32
    return %c0_i32, %c0_i32_0 : i32, i32
  }
  func.func @transform_7(%arg0: i32) -> (i32, i32) {
    %c0_i32 = arith.constant 0 : i32
    %c0_i32_0 = arith.constant 0 : i32
    %c0_i32_1 = arith.constant 0 : i32
    return %c0_i32, %c0_i32_0 : i32, i32
  }
  func.func @transform_8(%arg0: i32) -> (i32, i32) {
    %c0_i32 = arith.constant 0 : i32
    %c0_i32_0 = arith.constant 0 : i32
    %c0_i32_1 = arith.constant 0 : i32
    return %c0_i32, %c0_i32_0 : i32, i32
  }
  func.func @transform_9(%arg0: i32) -> (i32, i32) {
    %c0_i32 = arith.constant 0 : i32
    %c0_i32_0 = arith.constant 0 : i32
    %c0_i32_1 = arith.constant 0 : i32
    return %c0_i32, %c0_i32_0 : i32, i32
  }
  func.func @transform_10(%arg0: i32) -> (i32, i32, i32) {
    %c0_i32 = arith.constant 0 : i32
    %c0_i32_0 = arith.constant 0 : i32
    %c0_i32_1 = arith.constant 0 : i32
    %c0_i32_2 = arith.constant 0 : i32
    return %c0_i32, %c0_i32_0, %c0_i32_1 : i32, i32, i32
  }
  func.func @transform_11(%arg0: i32) -> (i32, i32, i32) {
    %c0_i32 = arith.constant 0 : i32
    %c0_i32_0 = arith.constant 0 : i32
    %c0_i32_1 = arith.constant 0 : i32
    %c0_i32_2 = arith.constant 0 : i32
    return %c0_i32, %c0_i32_0, %c0_i32_1 : i32, i32, i32
  }
  func.func @transform_12(%arg0: i32) -> (i32, i32, i32) {
    %c0_i32 = arith.constant 0 : i32
    %c0_i32_0 = arith.constant 0 : i32
    %c0_i32_1 = arith.constant 0 : i32
    return %arg0, %c0_i32, %c0_i32_0 : i32, i32, i32
  }
}

module attributes {stable_mosaic.version = 11 : i64} {
  func.func @attn_block_kernel(%arg0: i32, %arg1: memref<1x8x32xf32, #tpu.memory_space<vmem>>, %arg2: memref<1x12x32xf32, #tpu.memory_space<vmem>>, %arg3: memref<1x8x1xf32, #tpu.memory_space<vmem>>, %arg4: memref<1x1x12xf32, #tpu.memory_space<vmem>>, %arg5: memref<32x96xbf16, #tpu.memory_space<vmem>>, %arg6: memref<1x96xf32, #tpu.memory_space<vmem>>, %arg7: memref<32x32xbf16, #tpu.memory_space<vmem>>, %arg8: memref<1x32xf32, #tpu.memory_space<vmem>>, %arg9: memref<1x32xf32, #tpu.memory_space<vmem>>, %arg10: memref<1x32xf32, #tpu.memory_space<vmem>>, %arg11: memref<3x8x32xf32, #tpu.memory_space<vmem>>, %arg12: memref<3x12x32xf32, #tpu.memory_space<vmem>>, %arg13: memref<1x8x32xf32, #tpu.memory_space<vmem>>) attributes {dimension_semantics = [#tpu.dimension_semantics<parallel>], iteration_bounds = array<i64: 2>, scalar_prefetch = 0 : i64, scratch_operands = 0 : i64, tpu.core_type = #tpu.core_type<tc>, window_params = [{transform_indices = @transform_0, window_bounds = array<i64: 1, 8, 32>}, {transform_indices = @transform_1, window_bounds = array<i64: 1, 12, 32>}, {transform_indices = @transform_2, window_bounds = array<i64: 1, 8, 1>}, {transform_indices = @transform_3, window_bounds = array<i64: 1, 1, 12>}, {pipeline_mode = #tpu.pipeline_mode<synchronous>, transform_indices = @transform_4, window_bounds = array<i64: 32, 96>}, {pipeline_mode = #tpu.pipeline_mode<synchronous>, transform_indices = @transform_5, window_bounds = array<i64: 1, 96>}, {pipeline_mode = #tpu.pipeline_mode<synchronous>, transform_indices = @transform_6, window_bounds = array<i64: 32, 32>}, {pipeline_mode = #tpu.pipeline_mode<synchronous>, transform_indices = @transform_7, window_bounds = array<i64: 1, 32>}, {pipeline_mode = #tpu.pipeline_mode<synchronous>, transform_indices = @transform_8, window_bounds = array<i64: 1, 32>}, {pipeline_mode = #tpu.pipeline_mode<synchronous>, transform_indices = @transform_9, window_bounds = array<i64: 1, 32>}, {pipeline_mode = #tpu.pipeline_mode<synchronous>, transform_indices = @transform_10, window_bounds = array<i64: 3, 8, 32>}, {pipeline_mode = #tpu.pipeline_mode<synchronous>, transform_indices = @transform_11, window_bounds = array<i64: 3, 12, 32>}, {transform_indices = @transform_12, window_bounds = array<i64: 1, 8, 32>}]} {
    %c0 = arith.constant 0 : index
    %c0_0 = arith.constant 0 : index
    %c0_1 = arith.constant 0 : index
    %0 = vector.load %arg1[%c0, %c0_0, %c0_1] : memref<1x8x32xf32, #tpu.memory_space<vmem>>, vector<1x8x32xf32>
    %1 = vector.shape_cast %0 : vector<1x8x32xf32> to vector<8x32xf32>
    %2 = arith.truncf %1 : vector<8x32xf32> to vector<8x32xbf16>
    %c0_2 = arith.constant 0 : index
    %c0_3 = arith.constant 0 : index
    %c0_4 = arith.constant 0 : index
    %3 = vector.load %arg2[%c0_2, %c0_3, %c0_4] : memref<1x12x32xf32, #tpu.memory_space<vmem>>, vector<1x12x32xf32>
    %4 = vector.shape_cast %3 : vector<1x12x32xf32> to vector<12x32xf32>
    %5 = arith.truncf %4 : vector<12x32xf32> to vector<12x32xbf16>
    %c0_5 = arith.constant 0 : index
    %c0_6 = arith.constant 0 : index
    %6 = vector.load %arg5[%c0_5, %c0_6] : memref<32x96xbf16, #tpu.memory_space<vmem>>, vector<32x32xbf16>
    %cst = arith.constant dense<0.000000e+00> : vector<8x32xf32>
    %7 = tpu.matmul %2, %6, %cst {dimension_numbers = #tpu.dot_dimension_numbers<[1], [0], [0], [1], [0, 0, 1, 1], [], []>} : vector<8x32xbf16>, vector<32x32xbf16>, vector<8x32xf32> -> vector<8x32xf32>
    %c0_7 = arith.constant 0 : index
    %c0_8 = arith.constant 0 : index
    %8 = vector.load %arg6[%c0_7, %c0_8] : memref<1x96xf32, #tpu.memory_space<vmem>>, vector<1x32xf32>
    %9 = vector.broadcast %8 : vector<1x32xf32> to vector<8x32xf32>
    %10 = arith.addf %7, %9 : vector<8x32xf32>
    %c0_9 = arith.constant 0 : index
    %c32 = arith.constant 32 : index
    %11 = vector.load %arg5[%c0_9, %c32] : memref<32x96xbf16, #tpu.memory_space<vmem>>, vector<32x64xbf16>
    %cst_10 = arith.constant dense<0.000000e+00> : vector<12x64xf32>
    %12 = tpu.matmul %5, %11, %cst_10 {dimension_numbers = #tpu.dot_dimension_numbers<[1], [0], [0], [1], [0, 0, 1, 1], [], []>} : vector<12x32xbf16>, vector<32x64xbf16>, vector<12x64xf32> -> vector<12x64xf32>
    %c0_11 = arith.constant 0 : index
    %c32_12 = arith.constant 32 : index
    %13 = vector.load %arg6[%c0_11, %c32_12] : memref<1x96xf32, #tpu.memory_space<vmem>>, vector<1x64xf32>
    %14 = vector.broadcast %13 : vector<1x64xf32> to vector<12x64xf32>
    %15 = arith.addf %12, %14 : vector<12x64xf32>
    %16 = vector.extract_strided_slice %15 {offsets = [0, 0], sizes = [12, 32], strides = [1, 1]} : vector<12x64xf32> to vector<12x32xf32>
    %17 = vector.extract_strided_slice %15 {offsets = [0, 32], sizes = [12, 32], strides = [1, 1]} : vector<12x64xf32> to vector<12x32xf32>
    %c0_13 = arith.constant 0 : index
    %c0_14 = arith.constant 0 : index
    %c0_15 = arith.constant 0 : index
    %18 = vector.load %arg11[%c0_13, %c0_14, %c0_15] : memref<3x8x32xf32, #tpu.memory_space<vmem>>, vector<1x8x32xf32>
    %19 = vector.shape_cast %18 : vector<1x8x32xf32> to vector<8x32xf32>
    %c1 = arith.constant 1 : index
    %c0_16 = arith.constant 0 : index
    %c0_17 = arith.constant 0 : index
    %20 = vector.load %arg11[%c1, %c0_16, %c0_17] : memref<3x8x32xf32, #tpu.memory_space<vmem>>, vector<1x8x32xf32>
    %21 = vector.shape_cast %20 : vector<1x8x32xf32> to vector<8x32xf32>
    %c2 = arith.constant 2 : index
    %c0_18 = arith.constant 0 : index
    %c0_19 = arith.constant 0 : index
    %22 = vector.load %arg11[%c2, %c0_18, %c0_19] : memref<3x8x32xf32, #tpu.memory_space<vmem>>, vector<1x8x32xf32>
    %23 = vector.shape_cast %22 : vector<1x8x32xf32> to vector<8x32xf32>
    %24 = vector.extract_strided_slice %10 {offsets = [0, 4], sizes = [8, 28], strides = [1, 1]} : vector<8x32xf32> to vector<8x28xf32>
    %25 = vector.extract_strided_slice %10 {offsets = [0, 0], sizes = [8, 4], strides = [1, 1]} : vector<8x32xf32> to vector<8x4xf32>
    %26 = tpu.concatenate %24, %25 in 1 : vector<8x28xf32>, vector<8x4xf32> -> vector<8x32xf32>
    %27 = vector.extract_strided_slice %10 {offsets = [0, 28], sizes = [8, 4], strides = [1, 1]} : vector<8x32xf32> to vector<8x4xf32>
    %28 = vector.extract_strided_slice %10 {offsets = [0, 0], sizes = [8, 28], strides = [1, 1]} : vector<8x32xf32> to vector<8x28xf32>
    %29 = tpu.concatenate %27, %28 in 1 : vector<8x4xf32>, vector<8x28xf32> -> vector<8x32xf32>
    %30 = arith.mulf %10, %19 : vector<8x32xf32>
    %31 = arith.mulf %26, %21 : vector<8x32xf32>
    %32 = arith.addf %30, %31 : vector<8x32xf32>
    %33 = arith.mulf %29, %23 : vector<8x32xf32>
    %34 = arith.addf %32, %33 : vector<8x32xf32>
    %c0_20 = arith.constant 0 : index
    %c0_21 = arith.constant 0 : index
    %c0_22 = arith.constant 0 : index
    %35 = vector.load %arg12[%c0_20, %c0_21, %c0_22] : memref<3x12x32xf32, #tpu.memory_space<vmem>>, vector<1x12x32xf32>
    %36 = vector.shape_cast %35 : vector<1x12x32xf32> to vector<12x32xf32>
    %c1_23 = arith.constant 1 : index
    %c0_24 = arith.constant 0 : index
    %c0_25 = arith.constant 0 : index
    %37 = vector.load %arg12[%c1_23, %c0_24, %c0_25] : memref<3x12x32xf32, #tpu.memory_space<vmem>>, vector<1x12x32xf32>
    %38 = vector.shape_cast %37 : vector<1x12x32xf32> to vector<12x32xf32>
    %c2_26 = arith.constant 2 : index
    %c0_27 = arith.constant 0 : index
    %c0_28 = arith.constant 0 : index
    %39 = vector.load %arg12[%c2_26, %c0_27, %c0_28] : memref<3x12x32xf32, #tpu.memory_space<vmem>>, vector<1x12x32xf32>
    %40 = vector.shape_cast %39 : vector<1x12x32xf32> to vector<12x32xf32>
    %41 = vector.extract_strided_slice %16 {offsets = [0, 4], sizes = [12, 28], strides = [1, 1]} : vector<12x32xf32> to vector<12x28xf32>
    %42 = vector.extract_strided_slice %16 {offsets = [0, 0], sizes = [12, 4], strides = [1, 1]} : vector<12x32xf32> to vector<12x4xf32>
    %43 = tpu.concatenate %41, %42 in 1 : vector<12x28xf32>, vector<12x4xf32> -> vector<12x32xf32>
    %44 = vector.extract_strided_slice %16 {offsets = [0, 28], sizes = [12, 4], strides = [1, 1]} : vector<12x32xf32> to vector<12x4xf32>
    %45 = vector.extract_strided_slice %16 {offsets = [0, 0], sizes = [12, 28], strides = [1, 1]} : vector<12x32xf32> to vector<12x28xf32>
    %46 = tpu.concatenate %44, %45 in 1 : vector<12x4xf32>, vector<12x28xf32> -> vector<12x32xf32>
    %47 = arith.mulf %16, %36 : vector<12x32xf32>
    %48 = arith.mulf %43, %38 : vector<12x32xf32>
    %49 = arith.addf %47, %48 : vector<12x32xf32>
    %50 = arith.mulf %46, %40 : vector<12x32xf32>
    %51 = arith.addf %49, %50 : vector<12x32xf32>
    %c0_29 = arith.constant 0 : index
    %c0_30 = arith.constant 0 : index
    %c0_31 = arith.constant 0 : index
    %52 = vector.load %arg3[%c0_29, %c0_30, %c0_31] : memref<1x8x1xf32, #tpu.memory_space<vmem>>, vector<1x8x1xf32>
    %53 = vector.shape_cast %52 : vector<1x8x1xf32> to vector<8x1xf32>
    %c0_32 = arith.constant 0 : index
    %c0_33 = arith.constant 0 : index
    %c0_34 = arith.constant 0 : index
    %54 = vector.load %arg4[%c0_32, %c0_33, %c0_34] : memref<1x1x12xf32, #tpu.memory_space<vmem>>, vector<1x1x12xf32>
    %55 = vector.shape_cast %54 : vector<1x1x12xf32> to vector<1x12xf32>
    %56 = vector.broadcast %53 : vector<8x1xf32> to vector<8x12xf32>
    %57 = vector.broadcast %55 : vector<1x12xf32> to vector<8x12xf32>
    %58 = arith.mulf %56, %57 : vector<8x12xf32>
    %cst_35 = arith.constant 5.000000e-01 : f32
    %59 = vector.broadcast %cst_35 : f32 to vector<8x12xf32>
    %60 = arith.cmpf ogt, %58, %59 : vector<8x12xf32>
    %cst_36 = arith.constant 2.500000e-01 : f32
    %61 = vector.broadcast %cst_36 : f32 to vector<8x32xf32>
    %62 = arith.mulf %34, %61 : vector<8x32xf32>
    %63 = arith.truncf %62 : vector<8x32xf32> to vector<8x32xbf16>
    %64 = arith.truncf %51 : vector<12x32xf32> to vector<12x32xbf16>
    %65 = arith.truncf %17 : vector<12x32xf32> to vector<12x32xbf16>
    %66 = vector.extract_strided_slice %63 {offsets = [0, 0], sizes = [8, 16], strides = [1, 1]} : vector<8x32xbf16> to vector<8x16xbf16>
    %67 = vector.extract_strided_slice %64 {offsets = [0, 0], sizes = [12, 16], strides = [1, 1]} : vector<12x32xbf16> to vector<12x16xbf16>
    %cst_37 = arith.constant dense<0.000000e+00> : vector<8x12xf32>
    %68 = tpu.matmul %66, %67, %cst_37 {dimension_numbers = #tpu.dot_dimension_numbers<[1], [1], [0], [0], [0, 0, 1, 0], [], []>} : vector<8x16xbf16>, vector<12x16xbf16>, vector<8x12xf32> -> vector<8x12xf32>
    %cst_38 = arith.constant -1.000000e+04 : f32
    %69 = vector.broadcast %cst_38 : f32 to vector<8x12xf32>
    %70 = arith.select %60, %68, %69 : vector<8x12xi1>, vector<8x12xf32>
    %cst_39 = arith.constant dense<0xFF800000> : vector<8xf32>
    %71 = vector.multi_reduction <maximumf>, %70, %cst_39 [1] : vector<8x12xf32> to vector<8xf32>
    %72 = vector.shape_cast %71 : vector<8xf32> to vector<8x1xf32>
    %73 = vector.broadcast %72 : vector<8x1xf32> to vector<8x12xf32>
    %74 = arith.subf %70, %73 : vector<8x12xf32>
    %75 = math.exp %74 : vector<8x12xf32>
    %cst_40 = arith.constant dense<0.000000e+00> : vector<8xf32>
    %76 = vector.multi_reduction <add>, %75, %cst_40 [1] : vector<8x12xf32> to vector<8xf32>
    %77 = vector.shape_cast %76 : vector<8xf32> to vector<8x1xf32>
    %78 = tpu.reciprocal %77 {approx = true} : vector<8x1xf32> -> vector<8x1xf32>
    %79 = arith.mulf %77, %78 : vector<8x1xf32>
    %cst_41 = arith.constant 2.000000e+00 : f32
    %80 = vector.broadcast %cst_41 : f32 to vector<8x1xf32>
    %81 = arith.subf %80, %79 : vector<8x1xf32>
    %82 = arith.mulf %78, %81 : vector<8x1xf32>
    %83 = vector.broadcast %82 : vector<8x1xf32> to vector<8x12xf32>
    %84 = arith.mulf %75, %83 : vector<8x12xf32>
    %85 = arith.truncf %84 : vector<8x12xf32> to vector<8x12xbf16>
    %86 = vector.extract_strided_slice %65 {offsets = [0, 0], sizes = [12, 16], strides = [1, 1]} : vector<12x32xbf16> to vector<12x16xbf16>
    %cst_42 = arith.constant dense<0.000000e+00> : vector<8x16xf32>
    %87 = tpu.matmul %85, %86, %cst_42 {dimension_numbers = #tpu.dot_dimension_numbers<[1], [0], [0], [1], [0, 0, 1, 1], [], []>} : vector<8x12xbf16>, vector<12x16xbf16>, vector<8x16xf32> -> vector<8x16xf32>
    %88 = vector.extract_strided_slice %63 {offsets = [0, 16], sizes = [8, 16], strides = [1, 1]} : vector<8x32xbf16> to vector<8x16xbf16>
    %89 = vector.extract_strided_slice %64 {offsets = [0, 16], sizes = [12, 16], strides = [1, 1]} : vector<12x32xbf16> to vector<12x16xbf16>
    %cst_43 = arith.constant dense<0.000000e+00> : vector<8x12xf32>
    %90 = tpu.matmul %88, %89, %cst_43 {dimension_numbers = #tpu.dot_dimension_numbers<[1], [1], [0], [0], [0, 0, 1, 0], [], []>} : vector<8x16xbf16>, vector<12x16xbf16>, vector<8x12xf32> -> vector<8x12xf32>
    %cst_44 = arith.constant -1.000000e+04 : f32
    %91 = vector.broadcast %cst_44 : f32 to vector<8x12xf32>
    %92 = arith.select %60, %90, %91 : vector<8x12xi1>, vector<8x12xf32>
    %cst_45 = arith.constant dense<0xFF800000> : vector<8xf32>
    %93 = vector.multi_reduction <maximumf>, %92, %cst_45 [1] : vector<8x12xf32> to vector<8xf32>
    %94 = vector.shape_cast %93 : vector<8xf32> to vector<8x1xf32>
    %95 = vector.broadcast %94 : vector<8x1xf32> to vector<8x12xf32>
    %96 = arith.subf %92, %95 : vector<8x12xf32>
    %97 = math.exp %96 : vector<8x12xf32>
    %cst_46 = arith.constant dense<0.000000e+00> : vector<8xf32>
    %98 = vector.multi_reduction <add>, %97, %cst_46 [1] : vector<8x12xf32> to vector<8xf32>
    %99 = vector.shape_cast %98 : vector<8xf32> to vector<8x1xf32>
    %100 = tpu.reciprocal %99 {approx = true} : vector<8x1xf32> -> vector<8x1xf32>
    %101 = arith.mulf %99, %100 : vector<8x1xf32>
    %cst_47 = arith.constant 2.000000e+00 : f32
    %102 = vector.broadcast %cst_47 : f32 to vector<8x1xf32>
    %103 = arith.subf %102, %101 : vector<8x1xf32>
    %104 = arith.mulf %100, %103 : vector<8x1xf32>
    %105 = vector.broadcast %104 : vector<8x1xf32> to vector<8x12xf32>
    %106 = arith.mulf %97, %105 : vector<8x12xf32>
    %107 = arith.truncf %106 : vector<8x12xf32> to vector<8x12xbf16>
    %108 = vector.extract_strided_slice %65 {offsets = [0, 16], sizes = [12, 16], strides = [1, 1]} : vector<12x32xbf16> to vector<12x16xbf16>
    %cst_48 = arith.constant dense<0.000000e+00> : vector<8x16xf32>
    %109 = tpu.matmul %107, %108, %cst_48 {dimension_numbers = #tpu.dot_dimension_numbers<[1], [0], [0], [1], [0, 0, 1, 1], [], []>} : vector<8x12xbf16>, vector<12x16xbf16>, vector<8x16xf32> -> vector<8x16xf32>
    %110 = tpu.concatenate %87, %109 in 1 : vector<8x16xf32>, vector<8x16xf32> -> vector<8x32xf32>
    %111 = arith.truncf %110 : vector<8x32xf32> to vector<8x32xbf16>
    %c0_49 = arith.constant 0 : index
    %c0_50 = arith.constant 0 : index
    %112 = vector.load %arg7[%c0_49, %c0_50] : memref<32x32xbf16, #tpu.memory_space<vmem>>, vector<32x32xbf16>
    %cst_51 = arith.constant dense<0.000000e+00> : vector<8x32xf32>
    %113 = tpu.matmul %111, %112, %cst_51 {dimension_numbers = #tpu.dot_dimension_numbers<[1], [0], [0], [1], [0, 0, 1, 1], [], []>} : vector<8x32xbf16>, vector<32x32xbf16>, vector<8x32xf32> -> vector<8x32xf32>
    %c0_52 = arith.constant 0 : index
    %c0_53 = arith.constant 0 : index
    %114 = vector.load %arg8[%c0_52, %c0_53] : memref<1x32xf32, #tpu.memory_space<vmem>>, vector<1x32xf32>
    %115 = vector.broadcast %114 : vector<1x32xf32> to vector<8x32xf32>
    %116 = arith.addf %113, %115 : vector<8x32xf32>
    %117 = arith.addf %1, %116 : vector<8x32xf32>
    %cst_54 = arith.constant dense<0.000000e+00> : vector<8xf32>
    %118 = vector.multi_reduction <add>, %117, %cst_54 [1] : vector<8x32xf32> to vector<8xf32>
    %119 = vector.shape_cast %118 : vector<8xf32> to vector<8x1xf32>
    %cst_55 = arith.constant 3.200000e+01 : f32
    %120 = vector.broadcast %cst_55 : f32 to vector<8x1xf32>
    %121 = arith.divf %119, %120 : vector<8x1xf32>
    %122 = vector.broadcast %121 : vector<8x1xf32> to vector<8x32xf32>
    %123 = arith.subf %117, %122 : vector<8x32xf32>
    %124 = arith.mulf %123, %123 : vector<8x32xf32>
    %cst_56 = arith.constant dense<0.000000e+00> : vector<8xf32>
    %125 = vector.multi_reduction <add>, %124, %cst_56 [1] : vector<8x32xf32> to vector<8xf32>
    %126 = vector.shape_cast %125 : vector<8xf32> to vector<8x1xf32>
    %cst_57 = arith.constant 3.200000e+01 : f32
    %127 = vector.broadcast %cst_57 : f32 to vector<8x1xf32>
    %128 = arith.divf %126, %127 : vector<8x1xf32>
    %129 = vector.broadcast %121 : vector<8x1xf32> to vector<8x32xf32>
    %130 = arith.subf %117, %129 : vector<8x32xf32>
    %cst_58 = arith.constant 9.99999974E-5 : f32
    %131 = vector.broadcast %cst_58 : f32 to vector<8x1xf32>
    %132 = arith.addf %128, %131 : vector<8x1xf32>
    %133 = math.rsqrt %132 : vector<8x1xf32>
    %134 = vector.broadcast %133 : vector<8x1xf32> to vector<8x32xf32>
    %135 = arith.mulf %130, %134 : vector<8x32xf32>
    %c0_59 = arith.constant 0 : index
    %c0_60 = arith.constant 0 : index
    %136 = vector.load %arg9[%c0_59, %c0_60] : memref<1x32xf32, #tpu.memory_space<vmem>>, vector<1x32xf32>
    %137 = vector.broadcast %136 : vector<1x32xf32> to vector<8x32xf32>
    %138 = arith.mulf %135, %137 : vector<8x32xf32>
    %c0_61 = arith.constant 0 : index
    %c0_62 = arith.constant 0 : index
    %139 = vector.load %arg10[%c0_61, %c0_62] : memref<1x32xf32, #tpu.memory_space<vmem>>, vector<1x32xf32>
    %140 = vector.broadcast %139 : vector<1x32xf32> to vector<8x32xf32>
    %141 = arith.addf %138, %140 : vector<8x32xf32>
    %c0_63 = arith.constant 0 : index
    %c0_64 = arith.constant 0 : index
    %c0_65 = arith.constant 0 : index
    %142 = vector.load %arg13[%c0_63, %c0_64, %c0_65] : memref<1x8x32xf32, #tpu.memory_space<vmem>>, vector<1x8x32xf32>
    %143 = vector.shape_cast %142 : vector<1x8x32xf32> to vector<8x32xf32>
    %144 = vector.shape_cast %141 : vector<8x32xf32> to vector<1x8x32xf32>
    tpu.vector_store %arg13[%c0_63, %c0_64, %c0_65], %144 {strides = array<i32>} : memref<1x8x32xf32, #tpu.memory_space<vmem>>, vector<1x8x32xf32>,
    return
  }
  func.func @transform_0(%arg0: i32) -> (i32, i32, i32) {
    %c0_i32 = arith.constant 0 : i32
    %c0_i32_0 = arith.constant 0 : i32
    %c0_i32_1 = arith.constant 0 : i32
    return %arg0, %c0_i32, %c0_i32_0 : i32, i32, i32
  }
  func.func @transform_1(%arg0: i32) -> (i32, i32, i32) {
    %c0_i32 = arith.constant 0 : i32
    %c0_i32_0 = arith.constant 0 : i32
    %c0_i32_1 = arith.constant 0 : i32
    return %arg0, %c0_i32, %c0_i32_0 : i32, i32, i32
  }
  func.func @transform_2(%arg0: i32) -> (i32, i32, i32) {
    %c0_i32 = arith.constant 0 : i32
    %c0_i32_0 = arith.constant 0 : i32
    %c0_i32_1 = arith.constant 0 : i32
    return %arg0, %c0_i32, %c0_i32_0 : i32, i32, i32
  }
  func.func @transform_3(%arg0: i32) -> (i32, i32, i32) {
    %c0_i32 = arith.constant 0 : i32
    %c0_i32_0 = arith.constant 0 : i32
    %c0_i32_1 = arith.constant 0 : i32
    return %arg0, %c0_i32, %c0_i32_0 : i32, i32, i32
  }
  func.func @transform_4(%arg0: i32) -> (i32, i32) {
    %c0_i32 = arith.constant 0 : i32
    %c0_i32_0 = arith.constant 0 : i32
    %c0_i32_1 = arith.constant 0 : i32
    return %c0_i32, %c0_i32_0 : i32, i32
  }
  func.func @transform_5(%arg0: i32) -> (i32, i32) {
    %c0_i32 = arith.constant 0 : i32
    %c0_i32_0 = arith.constant 0 : i32
    %c0_i32_1 = arith.constant 0 : i32
    return %c0_i32, %c0_i32_0 : i32, i32
  }
  func.func @transform_6(%arg0: i32) -> (i32, i32) {
    %c0_i32 = arith.constant 0 : i32
    %c0_i32_0 = arith.constant 0 : i32
    %c0_i32_1 = arith.constant 0 : i32
    return %c0_i32, %c0_i32_0 : i32, i32
  }
  func.func @transform_7(%arg0: i32) -> (i32, i32) {
    %c0_i32 = arith.constant 0 : i32
    %c0_i32_0 = arith.constant 0 : i32
    %c0_i32_1 = arith.constant 0 : i32
    return %c0_i32, %c0_i32_0 : i32, i32
  }
  func.func @transform_8(%arg0: i32) -> (i32, i32) {
    %c0_i32 = arith.constant 0 : i32
    %c0_i32_0 = arith.constant 0 : i32
    %c0_i32_1 = arith.constant 0 : i32
    return %c0_i32, %c0_i32_0 : i32, i32
  }
  func.func @transform_9(%arg0: i32) -> (i32, i32) {
    %c0_i32 = arith.constant 0 : i32
    %c0_i32_0 = arith.constant 0 : i32
    %c0_i32_1 = arith.constant 0 : i32
    return %c0_i32, %c0_i32_0 : i32, i32
  }
  func.func @transform_10(%arg0: i32) -> (i32, i32, i32) {
    %c0_i32 = arith.constant 0 : i32
    %c0_i32_0 = arith.constant 0 : i32
    %c0_i32_1 = arith.constant 0 : i32
    %c0_i32_2 = arith.constant 0 : i32
    return %c0_i32, %c0_i32_0, %c0_i32_1 : i32, i32, i32
  }
  func.func @transform_11(%arg0: i32) -> (i32, i32, i32) {
    %c0_i32 = arith.constant 0 : i32
    %c0_i32_0 = arith.constant 0 : i32
    %c0_i32_1 = arith.constant 0 : i32
    %c0_i32_2 = arith.constant 0 : i32
    return %c0_i32, %c0_i32_0, %c0_i32_1 : i32, i32, i32
  }
  func.func @transform_12(%arg0: i32) -> (i32, i32, i32) {
    %c0_i32 = arith.constant 0 : i32
    %c0_i32_0 = arith.constant 0 : i32
    %c0_i32_1 = arith.constant 0 : i32
    return %arg0, %c0_i32, %c0_i32_0 : i32, i32, i32
  }
}

module attributes {stable_mosaic.version = 11 : i64} {
  func.func @ffn_block_kernel(%arg0: i32, %arg1: i32, %arg2: memref<1x8x32xf32, #tpu.memory_space<vmem>>, %arg3: memref<1x8x1xf32, #tpu.memory_space<vmem>>, %arg4: memref<32x64xbf16, #tpu.memory_space<vmem>>, %arg5: memref<1x64xf32, #tpu.memory_space<vmem>>, %arg6: memref<64x32xbf16, #tpu.memory_space<vmem>>, %arg7: memref<1x32xf32, #tpu.memory_space<vmem>>, %arg8: memref<1x32xf32, #tpu.memory_space<vmem>>, %arg9: memref<1x32xf32, #tpu.memory_space<vmem>>, %arg10: memref<1x8x32xf32, #tpu.memory_space<vmem>>) attributes {dimension_semantics = [#tpu.dimension_semantics<parallel>, #tpu.dimension_semantics<parallel>], iteration_bounds = array<i64: 2, 1>, scalar_prefetch = 0 : i64, scratch_operands = 0 : i64, tpu.core_type = #tpu.core_type<tc>, window_params = [{transform_indices = @transform_0, window_bounds = array<i64: 1, 8, 32>}, {transform_indices = @transform_1, window_bounds = array<i64: 1, 8, 1>}, {pipeline_mode = #tpu.pipeline_mode<synchronous>, transform_indices = @transform_2, window_bounds = array<i64: 32, 64>}, {pipeline_mode = #tpu.pipeline_mode<synchronous>, transform_indices = @transform_3, window_bounds = array<i64: 1, 64>}, {pipeline_mode = #tpu.pipeline_mode<synchronous>, transform_indices = @transform_4, window_bounds = array<i64: 64, 32>}, {pipeline_mode = #tpu.pipeline_mode<synchronous>, transform_indices = @transform_5, window_bounds = array<i64: 1, 32>}, {pipeline_mode = #tpu.pipeline_mode<synchronous>, transform_indices = @transform_6, window_bounds = array<i64: 1, 32>}, {pipeline_mode = #tpu.pipeline_mode<synchronous>, transform_indices = @transform_7, window_bounds = array<i64: 1, 32>}, {transform_indices = @transform_8, window_bounds = array<i64: 1, 8, 32>}]} {
    %c0 = arith.constant 0 : index
    %c0_0 = arith.constant 0 : index
    %c0_1 = arith.constant 0 : index
    %0 = vector.load %arg2[%c0, %c0_0, %c0_1] : memref<1x8x32xf32, #tpu.memory_space<vmem>>, vector<1x8x32xf32>
    %1 = vector.shape_cast %0 : vector<1x8x32xf32> to vector<8x32xf32>
    %c0_2 = arith.constant 0 : index
    %c0_3 = arith.constant 0 : index
    %c0_4 = arith.constant 0 : index
    %2 = vector.load %arg3[%c0_2, %c0_3, %c0_4] : memref<1x8x1xf32, #tpu.memory_space<vmem>>, vector<1x8x1xf32>
    %3 = vector.shape_cast %2 : vector<1x8x1xf32> to vector<8x1xf32>
    %4 = vector.broadcast %3 : vector<8x1xf32> to vector<8x32xf32>
    %5 = arith.mulf %1, %4 : vector<8x32xf32>
    %6 = arith.truncf %5 : vector<8x32xf32> to vector<8x32xbf16>
    %c0_5 = arith.constant 0 : index
    %c0_6 = arith.constant 0 : index
    %7 = vector.load %arg4[%c0_5, %c0_6] : memref<32x64xbf16, #tpu.memory_space<vmem>>, vector<32x64xbf16>
    %cst = arith.constant dense<0.000000e+00> : vector<8x64xf32>
    %8 = tpu.matmul %6, %7, %cst {dimension_numbers = #tpu.dot_dimension_numbers<[1], [0], [0], [1], [0, 0, 1, 1], [], []>} : vector<8x32xbf16>, vector<32x64xbf16>, vector<8x64xf32> -> vector<8x64xf32>
    %c0_7 = arith.constant 0 : index
    %c0_8 = arith.constant 0 : index
    %9 = vector.load %arg5[%c0_7, %c0_8] : memref<1x64xf32, #tpu.memory_space<vmem>>, vector<1x64xf32>
    %10 = vector.broadcast %9 : vector<1x64xf32> to vector<8x64xf32>
    %11 = arith.addf %8, %10 : vector<8x64xf32>
    %cst_9 = arith.constant 0.000000e+00 : f32
    %12 = vector.broadcast %cst_9 : f32 to vector<8x64xf32>
    %13 = arith.maximumf %11, %12 : vector<8x64xf32>
    %14 = vector.broadcast %3 : vector<8x1xf32> to vector<8x64xf32>
    %15 = arith.mulf %13, %14 : vector<8x64xf32>
    %16 = arith.truncf %15 : vector<8x64xf32> to vector<8x64xbf16>
    %c0_10 = arith.constant 0 : index
    %c0_11 = arith.constant 0 : index
    %17 = vector.load %arg6[%c0_10, %c0_11] : memref<64x32xbf16, #tpu.memory_space<vmem>>, vector<64x32xbf16>
    %cst_12 = arith.constant dense<0.000000e+00> : vector<8x32xf32>
    %18 = tpu.matmul %16, %17, %cst_12 {dimension_numbers = #tpu.dot_dimension_numbers<[1], [0], [0], [1], [0, 0, 1, 1], [], []>} : vector<8x64xbf16>, vector<64x32xbf16>, vector<8x32xf32> -> vector<8x32xf32>
    %c0_13 = arith.constant 0 : index
    %c0_14 = arith.constant 0 : index
    %19 = vector.load %arg7[%c0_13, %c0_14] : memref<1x32xf32, #tpu.memory_space<vmem>>, vector<1x32xf32>
    %20 = vector.broadcast %19 : vector<1x32xf32> to vector<8x32xf32>
    %21 = arith.addf %18, %20 : vector<8x32xf32>
    %22 = vector.broadcast %3 : vector<8x1xf32> to vector<8x32xf32>
    %23 = arith.mulf %21, %22 : vector<8x32xf32>
    %24 = arith.addf %1, %23 : vector<8x32xf32>
    %cst_15 = arith.constant dense<0.000000e+00> : vector<8xf32>
    %25 = vector.multi_reduction <add>, %24, %cst_15 [1] : vector<8x32xf32> to vector<8xf32>
    %26 = vector.shape_cast %25 : vector<8xf32> to vector<8x1xf32>
    %cst_16 = arith.constant 3.200000e+01 : f32
    %27 = vector.broadcast %cst_16 : f32 to vector<8x1xf32>
    %28 = arith.divf %26, %27 : vector<8x1xf32>
    %29 = vector.broadcast %28 : vector<8x1xf32> to vector<8x32xf32>
    %30 = arith.subf %24, %29 : vector<8x32xf32>
    %31 = arith.mulf %30, %30 : vector<8x32xf32>
    %cst_17 = arith.constant dense<0.000000e+00> : vector<8xf32>
    %32 = vector.multi_reduction <add>, %31, %cst_17 [1] : vector<8x32xf32> to vector<8xf32>
    %33 = vector.shape_cast %32 : vector<8xf32> to vector<8x1xf32>
    %cst_18 = arith.constant 3.200000e+01 : f32
    %34 = vector.broadcast %cst_18 : f32 to vector<8x1xf32>
    %35 = arith.divf %33, %34 : vector<8x1xf32>
    %36 = vector.broadcast %28 : vector<8x1xf32> to vector<8x32xf32>
    %37 = arith.subf %24, %36 : vector<8x32xf32>
    %cst_19 = arith.constant 9.99999974E-5 : f32
    %38 = vector.broadcast %cst_19 : f32 to vector<8x1xf32>
    %39 = arith.addf %35, %38 : vector<8x1xf32>
    %40 = math.rsqrt %39 : vector<8x1xf32>
    %41 = vector.broadcast %40 : vector<8x1xf32> to vector<8x32xf32>
    %42 = arith.mulf %37, %41 : vector<8x32xf32>
    %c0_20 = arith.constant 0 : index
    %c0_21 = arith.constant 0 : index
    %43 = vector.load %arg8[%c0_20, %c0_21] : memref<1x32xf32, #tpu.memory_space<vmem>>, vector<1x32xf32>
    %44 = vector.broadcast %43 : vector<1x32xf32> to vector<8x32xf32>
    %45 = arith.mulf %42, %44 : vector<8x32xf32>
    %c0_22 = arith.constant 0 : index
    %c0_23 = arith.constant 0 : index
    %46 = vector.load %arg9[%c0_22, %c0_23] : memref<1x32xf32, #tpu.memory_space<vmem>>, vector<1x32xf32>
    %47 = vector.broadcast %46 : vector<1x32xf32> to vector<8x32xf32>
    %48 = arith.addf %45, %47 : vector<8x32xf32>
    %c0_24 = arith.constant 0 : index
    %c0_25 = arith.constant 0 : index
    %c0_26 = arith.constant 0 : index
    %49 = vector.load %arg10[%c0_24, %c0_25, %c0_26] : memref<1x8x32xf32, #tpu.memory_space<vmem>>, vector<1x8x32xf32>
    %50 = vector.shape_cast %49 : vector<1x8x32xf32> to vector<8x32xf32>
    %51 = vector.shape_cast %48 : vector<8x32xf32> to vector<1x8x32xf32>
    tpu.vector_store %arg10[%c0_24, %c0_25, %c0_26], %51 {strides = array<i32>} : memref<1x8x32xf32, #tpu.memory_space<vmem>>, vector<1x8x32xf32>,
    return
  }
  func.func @transform_0(%arg0: i32, %arg1: i32) -> (i32, i32, i32) {
    %c0_i32 = arith.constant 0 : i32
    %c0_i32_0 = arith.constant 0 : i32
    return %arg0, %arg1, %c0_i32 : i32, i32, i32
  }
  func.func @transform_1(%arg0: i32, %arg1: i32) -> (i32, i32, i32) {
    %c0_i32 = arith.constant 0 : i32
    %c0_i32_0 = arith.constant 0 : i32
    return %arg0, %arg1, %c0_i32 : i32, i32, i32
  }
  func.func @transform_2(%arg0: i32, %arg1: i32) -> (i32, i32) {
    %c0_i32 = arith.constant 0 : i32
    %c0_i32_0 = arith.constant 0 : i32
    %c0_i32_1 = arith.constant 0 : i32
    return %c0_i32, %c0_i32_0 : i32, i32
  }
  func.func @transform_3(%arg0: i32, %arg1: i32) -> (i32, i32) {
    %c0_i32 = arith.constant 0 : i32
    %c0_i32_0 = arith.constant 0 : i32
    %c0_i32_1 = arith.constant 0 : i32
    return %c0_i32, %c0_i32_0 : i32, i32
  }
  func.func @transform_4(%arg0: i32, %arg1: i32) -> (i32, i32) {
    %c0_i32 = arith.constant 0 : i32
    %c0_i32_0 = arith.constant 0 : i32
    %c0_i32_1 = arith.constant 0 : i32
    return %c0_i32, %c0_i32_0 : i32, i32
  }
  func.func @transform_5(%arg0: i32, %arg1: i32) -> (i32, i32) {
    %c0_i32 = arith.constant 0 : i32
    %c0_i32_0 = arith.constant 0 : i32
    %c0_i32_1 = arith.constant 0 : i32
    return %c0_i32, %c0_i32_0 : i32, i32
  }
  func.func @transform_6(%arg0: i32, %arg1: i32) -> (i32, i32) {
    %c0_i32 = arith.constant 0 : i32
    %c0_i32_0 = arith.constant 0 : i32
    %c0_i32_1 = arith.constant 0 : i32
    return %c0_i32, %c0_i32_0 : i32, i32
  }
  func.func @transform_7(%arg0: i32, %arg1: i32) -> (i32, i32) {
    %c0_i32 = arith.constant 0 : i32
    %c0_i32_0 = arith.constant 0 : i32
    %c0_i32_1 = arith.constant 0 : i32
    return %c0_i32, %c0_i32_0 : i32, i32
  }
  func.func @transform_8(%arg0: i32, %arg1: i32) -> (i32, i32, i32) {
    %c0_i32 = arith.constant 0 : i32
    %c0_i32_0 = arith.constant 0 : i32
    return %arg0, %arg1, %c0_i32 : i32, i32, i32
  }
}

</mosaic_0001>

<bundles_post_ra>
// kernel: tile.14
= control target key start
LH: loop header
LB: loop body
LE: loop exit
PB: predicated region body
PF: predicated region fallthrough
CT: control target
= control target key end

     0   :  { %vm122_vm0 = vcmask 1047556   ;;  %vm124_vm1 = vcmask 130048   ;;  %vm152_vm2 = vcmask 261248   ;;  %s336_s0 = inlined_call_operand.vmem [shape: f32[3,8,2,16], index: 0, kind: input, shape index: {}]   ;;  %s337_s1 = inlined_call_operand.vmem [shape: f32[3,8,32], index: 1, kind: output, shape index: {}]  }
   0x1   :  { %v214_v0 = vld [vmem:[%s336_s0 + $0xe] sm:$0x3]  ;;  %v215_v1 = vld [vmem:[%s336_s0 + $0xc] sm:$0x3]  ;;  %v216_v2 = vld [vmem:[%s336_s0 + $0xa] sm:$0x3] }
   0x2   :  { %88 = vst [vmem:[#allocation0 + $0x38] sm:$0x3] %v214_v0  ;;  %93 = vst [vmem:[#allocation0 + $0x30] sm:$0x3] %v215_v1  ;;  %v217_v3 = vld [vmem:[%s336_s0 + $0x8] sm:$0x3] }
   0x3   :  { %98 = vst [vmem:[#allocation0 + $0x28] sm:$0x3] %v216_v2  ;;  %v218_v4 = vld [vmem:[%s336_s0 + $0x6] sm:$0x3]  ;;  %v219_v5 = vld [vmem:[%s336_s0 + $0x4] sm:$0x3] }
   0x4   :  { %103 = vst [vmem:[#allocation0 + $0x20] sm:$0x3] %v217_v3  ;;  %108 = vst [vmem:[#allocation0 + $0x18] sm:$0x3] %v218_v4  ;;  %v220_v6 = vld [vmem:[%s336_s0 + $0x2] sm:$0x3] }
   0x5   :  { %113 = vst [vmem:[#allocation0 + $0x10] sm:$0x3] %v219_v5  ;;  %v118_v7 = vld [vmem:[%s336_s0] sm:$0x3]  ;;  %117 = vst [vmem:[#allocation0 + $0x8] sm:$0x3] %v220_v6 }
   0x6   :  { %119 = vst [vmem:[#allocation0] sm:$0x3] %v118_v7  ;;  %v206_v8 = vld [vmem:[%s336_s0 + $0x1e] sm:$0x3]  ;;  %v207_v9 = vld [vmem:[%s336_s0 + $0x1c] sm:$0x3] }
   0x7   :  { %v208_v10 = vld [vmem:[%s336_s0 + $0x1a] sm:$0x3]  ;;  %48 = vst [vmem:[#allocation0 + $0x78] sm:$0x3] %v206_v8  ;;  %53 = vst [vmem:[#allocation0 + $0x70] sm:$0x3] %v207_v9 }
   0x8   :  { %58 = vst [vmem:[#allocation0 + $0x68] sm:$0x3] %v208_v10  ;;  %v209_v11 = vld [vmem:[%s336_s0 + $0x18] sm:$0x3]  ;;  %v210_v12 = vld [vmem:[%s336_s0 + $0x16] sm:$0x3] }
   0x9   :  { %v211_v13 = vld [vmem:[%s336_s0 + $0x14] sm:$0x3]  ;;  %63 = vst [vmem:[#allocation0 + $0x60] sm:$0x3] %v209_v11  ;;  %68 = vst [vmem:[#allocation0 + $0x58] sm:$0x3] %v210_v12 }
   0xa   :  { %73 = vst [vmem:[#allocation0 + $0x50] sm:$0x3] %v211_v13  ;;  %v212_v14 = vld [vmem:[%s336_s0 + $0x12] sm:$0x3]  ;;  %v213_v15 = vld [vmem:[%s336_s0 + $0x10] sm:$0x3] }
   0xb   :  { %v198_v16 = vld [vmem:[%s336_s0 + $0x2e] sm:$0x3]  ;;  %78 = vst [vmem:[#allocation0 + $0x48] sm:$0x3] %v212_v14  ;;  %83 = vst [vmem:[#allocation0 + $0x40] sm:$0x3] %v213_v15 }
   0xc   :  { %8 = vst [vmem:[#allocation0 + $0xb8] sm:$0x3] %v198_v16  ;;  %v199_v17 = vld [vmem:[%s336_s0 + $0x2c] sm:$0x3]  ;;  %v200_v18 = vld [vmem:[%s336_s0 + $0x2a] sm:$0x3] }
   0xd   :  { %v201_v19 = vld [vmem:[%s336_s0 + $0x28] sm:$0x3]  ;;  %13 = vst [vmem:[#allocation0 + $0xb0] sm:$0x3] %v199_v17  ;;  %18 = vst [vmem:[#allocation0 + $0xa8] sm:$0x3] %v200_v18 }
   0xe   :  { %23 = vst [vmem:[#allocation0 + $0xa0] sm:$0x3] %v201_v19  ;;  %v202_v20 = vld [vmem:[%s336_s0 + $0x26] sm:$0x3]  ;;  %v203_v21 = vld [vmem:[%s336_s0 + $0x24] sm:$0x3] }
   0xf   :  { %v204_v22 = vld [vmem:[%s336_s0 + $0x22] sm:$0x3]  ;;  %28 = vst [vmem:[#allocation0 + $0x98] sm:$0x3] %v202_v20  ;;  %33 = vst [vmem:[#allocation0 + $0x90] sm:$0x3] %v203_v21 }
  0x10   :  { %38 = vst [vmem:[#allocation0 + $0x88] sm:$0x3] %v204_v22  ;;  %v205_v23 = vld [vmem:[%s336_s0 + $0x20] sm:$0x3]  ;;  %s226_s0 = smov 16  }
  0x11   :  { %v147_v24 = vld [vmem:[#allocation0 + $0x1] ss:$8 sm:$0xf0]   ;;  %43 = vst [vmem:[#allocation0 + $0x80] sm:$0x3] %v205_v23 }
  0x12   :  { %v121_v25 = vld [vmem:[#allocation0] ss:$8 sm:$0xf0]   ;;  %v145_v26 = vld [vmem:[#allocation0 + $0x1] ss:$8 sm:$0xf]  }
  0x13   :  { %v120_v27 = vld [vmem:[#allocation0] ss:$8 sm:$0xf]   ;;  %v149_v28 = vsel %vm122_vm0, %v147_v24, %v145_v26  ;;  %v157_v30 = vld [vmem:[#allocation0 + $0x41] ss:$8 sm:$0xf0]  }
  0x14   :  { %v123_v29 = vsel %vm122_vm0, %v121_v25, %v120_v27  ;;  %150 = vrot.lane.b32.xlu0 %v149_v28, %s226_s0  ;;  %v129_v31 = vld [vmem:[#allocation0 + $0x40] ss:$8 sm:$0xf0]   ;;  %v155_v32 = vld [vmem:[#allocation0 + $0x41] ss:$8 sm:$0xf]  }
  0x15   :  { %125 = vst.msk [vmem:[%s337_s1] sm:$0xff] %vm124_vm1, %v123_v29   ;;  %v127_v33 = vld [vmem:[#allocation0 + $0x40] ss:$8 sm:$0xf]   ;;  %v159_v34 = vsel %vm122_vm0, %v157_v30, %v155_v32 }
  0x16   :  { %v168_v35 = vld [vmem:[#allocation0 + $0x81] ss:$8 sm:$0xf0]   ;;  %v131_v36 = vsel %vm122_vm0, %v129_v31, %v127_v33  ;;  %v138_v37 = vld [vmem:[#allocation0 + $0x80] ss:$8 sm:$0xf0]  }
  0x17   :  { %221 = vst.msk [vmem:[%s337_s1 + $0x8] sm:$0xff] %vm124_vm1, %v131_v36  }
  0x18   :  { %160 = vrot.lane.b32.xlu0 %v159_v34, %s226_s0  ;;  %v166_v38 = vld [vmem:[#allocation0 + $0x81] ss:$8 sm:$0xf]   ;;  %v136_v39 = vld [vmem:[#allocation0 + $0x80] ss:$8 sm:$0xf]  }
  0x19   :  { %v170_v40 = vsel %vm122_vm0, %v168_v35, %v166_v38  ;;  %v140_v41 = vsel %vm122_vm0, %v138_v37, %v136_v39 }
  0x1a   :  { %171 = vrot.lane.b32.xlu1 %v170_v40, %s226_s0  ;;  %222 = vst.msk [vmem:[%s337_s1 + $0x10] sm:$0xff] %vm124_vm1, %v140_v41  }
  0x86   :  { %v151_v42 = vpop.permute.xlu0 %150  }
  0x87   :  { %153 = vst.msk [vmem:[%s337_s1] sm:$0xff] %vm152_vm2, %v151_v42  }
  0x8a   :  { %v161_v43 = vpop.permute.xlu0 %160  }
  0x8b   :  { %223 = vst.msk [vmem:[%s337_s1 + $0x8] sm:$0xff] %vm152_vm2, %v161_v43  }
  0x8c   :  { %v172_v44 = vpop.permute.xlu1 %171  }
  0x8d   :  { %224 = vst.msk [vmem:[%s337_s1 + $0x10] sm:$0xff] %vm152_vm2, %v172_v44  }

// kernel: tile.19
= control target key start
LH: loop header
LB: loop body
LE: loop exit
PB: predicated region body
PF: predicated region fallthrough
CT: control target
= control target key end

     0   :  { %vm182_vm0 = vcmask 1047556   ;;  %s355_s10 = smov 16   ;;  %vm184_vm1 = vcmask 130048   ;;  %vm228_vm2 = vcmask 261248   ;;  %s532_s0 = inlined_call_operand.vmem [shape: f32[3,12,2,16], index: 0, kind: input, shape index: {}]   ;;  %s533_s1 = inlined_call_operand.vmem [shape: f32[3,12,32], index: 1, kind: output, shape index: {}]  }
   0x1   :  { %v336_v0 = vld [vmem:[%s532_s0 + $0xe] sm:$0x3]  ;;  %v337_v1 = vld [vmem:[%s532_s0 + $0xc] sm:$0x3]  ;;  %v338_v2 = vld [vmem:[%s532_s0 + $0xa] sm:$0x3] }
   0x2   :  { %148 = vst [vmem:[#allocation0 + $0x38] sm:$0x3] %v336_v0  ;;  %153 = vst [vmem:[#allocation0 + $0x30] sm:$0x3] %v337_v1  ;;  %v339_v3 = vld [vmem:[%s532_s0 + $0x8] sm:$0x3] }
   0x3   :  { %158 = vst [vmem:[#allocation0 + $0x28] sm:$0x3] %v338_v2  ;;  %v340_v4 = vld [vmem:[%s532_s0 + $0x6] sm:$0x3]  ;;  %v341_v5 = vld [vmem:[%s532_s0 + $0x4] sm:$0x3] }
   0x4   :  { %163 = vst [vmem:[#allocation0 + $0x20] sm:$0x3] %v339_v3  ;;  %168 = vst [vmem:[#allocation0 + $0x18] sm:$0x3] %v340_v4  ;;  %v342_v6 = vld [vmem:[%s532_s0 + $0x2] sm:$0x3] }
   0x5   :  { %173 = vst [vmem:[#allocation0 + $0x10] sm:$0x3] %v341_v5  ;;  %v178_v7 = vld [vmem:[%s532_s0] sm:$0x3]  ;;  %177 = vst [vmem:[#allocation0 + $0x8] sm:$0x3] %v342_v6 }
   0x6   :  { %179 = vst [vmem:[#allocation0] sm:$0x3] %v178_v7  ;;  %v328_v8 = vld [vmem:[%s532_s0 + $0x1e] sm:$0x3]  ;;  %v329_v9 = vld [vmem:[%s532_s0 + $0x1c] sm:$0x3] }
   0x7   :  { %v330_v10 = vld [vmem:[%s532_s0 + $0x1a] sm:$0x3]  ;;  %108 = vst [vmem:[#allocation0 + $0x78] sm:$0x3] %v328_v8  ;;  %113 = vst [vmem:[#allocation0 + $0x70] sm:$0x3] %v329_v9 }
   0x8   :  { %118 = vst [vmem:[#allocation0 + $0x68] sm:$0x3] %v330_v10  ;;  %v331_v11 = vld [vmem:[%s532_s0 + $0x18] sm:$0x3]  ;;  %v332_v12 = vld [vmem:[%s532_s0 + $0x16] sm:$0x3] }
   0x9   :  { %v333_v13 = vld [vmem:[%s532_s0 + $0x14] sm:$0x3]  ;;  %123 = vst [vmem:[#allocation0 + $0x60] sm:$0x3] %v331_v11  ;;  %128 = vst [vmem:[#allocation0 + $0x58] sm:$0x3] %v332_v12 }
   0xa   :  { %133 = vst [vmem:[#allocation0 + $0x50] sm:$0x3] %v333_v13  ;;  %v334_v14 = vld [vmem:[%s532_s0 + $0x12] sm:$0x3]  ;;  %v335_v15 = vld [vmem:[%s532_s0 + $0x10] sm:$0x3] }
   0xb   :  { %v312_v16 = vld [vmem:[%s532_s0 + $0x3e] sm:$0x3]  ;;  %138 = vst [vmem:[#allocation0 + $0x48] sm:$0x3] %v334_v14  ;;  %143 = vst [vmem:[#allocation0 + $0x40] sm:$0x3] %v335_v15 }
   0xc   :  { %28 = vst [vmem:[#allocation0 + $0xf8] sm:$0x3] %v312_v16  ;;  %v313_v17 = vld [vmem:[%s532_s0 + $0x3c] sm:$0x3]  ;;  %v314_v18 = vld [vmem:[%s532_s0 + $0x3a] sm:$0x3] }
   0xd   :  { %v315_v19 = vld [vmem:[%s532_s0 + $0x38] sm:$0x3]  ;;  %33 = vst [vmem:[#allocation0 + $0xf0] sm:$0x3] %v313_v17  ;;  %38 = vst [vmem:[#allocation0 + $0xe8] sm:$0x3] %v314_v18 }
   0xe   :  { %43 = vst [vmem:[#allocation0 + $0xe0] sm:$0x3] %v315_v19  ;;  %v316_v20 = vld [vmem:[%s532_s0 + $0x36] sm:$0x3]  ;;  %v317_v21 = vld [vmem:[%s532_s0 + $0x34] sm:$0x3] }
   0xf   :  { %v318_v22 = vld [vmem:[%s532_s0 + $0x32] sm:$0x3]  ;;  %48 = vst [vmem:[#allocation0 + $0xd8] sm:$0x3] %v316_v20  ;;  %53 = vst [vmem:[#allocation0 + $0xd0] sm:$0x3] %v317_v21 }
  0x10   :  { %58 = vst [vmem:[#allocation0 + $0xc8] sm:$0x3] %v318_v22  ;;  %v319_v23 = vld [vmem:[%s532_s0 + $0x30] sm:$0x3]  ;;  %v320_v24 = vld [vmem:[%s532_s0 + $0x2e] sm:$0x3] }
  0x11   :  { %v321_v25 = vld [vmem:[%s532_s0 + $0x2c] sm:$0x3]  ;;  %v223_v26 = vld [vmem:[#allocation0 + $0x1] ss:$8 sm:$0xf0]  }
  0x12   :  { %63 = vst [vmem:[#allocation0 + $0xc0] sm:$0x3] %v319_v23  ;;  %68 = vst [vmem:[#allocation0 + $0xb8] sm:$0x3] %v320_v24  ;;  %v322_v27 = vld [vmem:[%s532_s0 + $0x2a] sm:$0x3] }
  0x13   :  { %73 = vst [vmem:[#allocation0 + $0xb0] sm:$0x3] %v321_v25  ;;  %v221_v28 = vld [vmem:[#allocation0 + $0x1] ss:$8 sm:$0xf]  }
  0x14   :  { %78 = vst [vmem:[#allocation0 + $0xa8] sm:$0x3] %v322_v27  ;;  %v323_v29 = vld [vmem:[%s532_s0 + $0x28] sm:$0x3]  ;;  %v225_v30 = vsel %vm182_vm0, %v223_v26, %v221_v28  ;;  %v308_v31 = vld [vmem:[%s532_s0 + $0x46] sm:$0x3] }
  0x15   :  { %83 = vst [vmem:[#allocation0 + $0xa0] sm:$0x3] %v323_v29  ;;  %v309_v32 = vld [vmem:[%s532_s0 + $0x44] sm:$0x3]  ;;  %v310_v33 = vld [vmem:[%s532_s0 + $0x42] sm:$0x3]  ;;  %226 = vrot.lane.b32.xlu0 %v225_v30, %s355_s10 }
  0x16   :  { %v244_v34 = vld [vmem:[#allocation0 + $0x41] ss:$8 sm:$0xf0]   ;;  %8 = vst [vmem:[#allocation0 + $0x118] sm:$0x3] %v308_v31 }
  0x17   :  { %13 = vst [vmem:[#allocation0 + $0x110] sm:$0x3] %v309_v32  ;;  %18 = vst [vmem:[#allocation0 + $0x108] sm:$0x3] %v310_v33  ;;  %v311_v35 = vld [vmem:[%s532_s0 + $0x40] sm:$0x3] }
  0x18   :  { %v242_v36 = vld [vmem:[#allocation0 + $0x41] ss:$8 sm:$0xf]   ;;  %23 = vst [vmem:[#allocation0 + $0x100] sm:$0x3] %v311_v35 }
  0x19   :  { %v324_v37 = vld [vmem:[%s532_s0 + $0x26] sm:$0x3]  ;;  %v246_v38 = vsel %vm182_vm0, %v244_v34, %v242_v36  ;;  %v233_v39 = vld [vmem:[#allocation0 + $0xc1] ss:$8 sm:$0xf0]  }
  0x1a   :  { %88 = vst [vmem:[#allocation0 + $0x98] sm:$0x3] %v324_v37  ;;  %v325_v40 = vld [vmem:[%s532_s0 + $0x24] sm:$0x3]  ;;  %247 = vrot.lane.b32.xlu1 %v246_v38, %s355_s10  ;;  %v326_v41 = vld [vmem:[%s532_s0 + $0x22] sm:$0x3] }
  0x1b   :  { %93 = vst [vmem:[#allocation0 + $0x90] sm:$0x3] %v325_v40  ;;  %v327_v42 = vld [vmem:[%s532_s0 + $0x20] sm:$0x3]  ;;  %98 = vst [vmem:[#allocation0 + $0x88] sm:$0x3] %v326_v41 }
  0x1c   :  { %v231_v43 = vld [vmem:[#allocation0 + $0xc1] ss:$8 sm:$0xf]   ;;  %103 = vst [vmem:[#allocation0 + $0x80] sm:$0x3] %v327_v42 }
  0x1d   :  { %v180_v44 = vld [vmem:[#allocation0] ss:$8 sm:$0xf]   ;;  %v235_v45 = vsel %vm182_vm0, %v233_v39, %v231_v43  ;;  %v268_v48 = vld [vmem:[#allocation0 + $0xa1] ss:$8 sm:$0xf]  }
  0x1e   :  { %v181_v46 = vld [vmem:[#allocation0] ss:$8 sm:$0xf0]   ;;  %236 = vrot.lane.b32.xlu0 %v235_v45, %s355_s10 }
  0x1f   :  { %v187_v47 = vld [vmem:[#allocation0 + $0x40] ss:$8 sm:$0xf]   ;;  %v183_v49 = vsel %vm182_vm0, %v181_v46, %v180_v44  ;;  %v255_v54 = vld [vmem:[#allocation0 + $0x101] ss:$8 sm:$0xf]  }
  0x20   :  { %v189_v50 = vld [vmem:[#allocation0 + $0x40] ss:$8 sm:$0xf0]   ;;  %185 = vst.msk [vmem:[%s533_s1] sm:$0xff] %vm184_vm1, %v183_v49  }
  0x21   :  { %v191_v51 = vsel %vm182_vm0, %v189_v50, %v187_v47  ;;  %v207_v52 = vld [vmem:[#allocation0 + $0xc0] ss:$8 sm:$0xf]  }
  0x22   :  { %v209_v53 = vld [vmem:[#allocation0 + $0xc0] ss:$8 sm:$0xf0]   ;;  %343 = vst.msk [vmem:[%s533_s1 + $0x8] sm:$0xf] %vm184_vm1, %v191_v51   ;;  %269 = vrot.lane.b32.xlu0 %v268_v48, %s355_s10 }
  0x23   :  { %344 = vst.msk [vmem:[%s533_s1 + $0xc] sm:$0xf0] %vm184_vm1, %v191_v51   ;;  %v211_v55 = vsel %vm182_vm0, %v209_v53, %v207_v52  ;;  %v200_v56 = vld [vmem:[#allocation0 + $0x80] ss:$8 sm:$0xf0]  }
  0x24   :  { %346 = vst.msk [vmem:[%s533_s1 + $0x20] sm:$0xff] %vm184_vm1, %v211_v55   ;;  %v216_v57 = vld [vmem:[#allocation0 + $0x100] ss:$8 sm:$0xf]  }
  0x25   :  { %347 = vst.msk [vmem:[%s533_s1 + $0x28] sm:$0xf] %vm184_vm1, %v216_v57   ;;  %v257_v58 = vld [vmem:[#allocation0 + $0x61] ss:$8 sm:$0xf0]  }
  0x26   :  { %v198_v59 = vld [vmem:[#allocation0 + $0x80] ss:$8 sm:$0xf]   ;;  %v259_v60 = vsel %vm182_vm0, %v257_v58, %v255_v54 }
  0x27   :  { %v202_v61 = vsel %vm182_vm0, %v200_v56, %v198_v59  ;;  %260 = vrot.lane.b32.xlu1 %v259_v60, %s355_s10 }
  0x28   :  { %345 = vst.msk [vmem:[%s533_s1 + $0x14] sm:$0xff] %vm184_vm1, %v202_v61  }
  0x87   :  { %v227_v62 = vpop.permute.xlu0 %226  }
  0x88   :  { %229 = vst.msk [vmem:[%s533_s1] sm:$0xff] %vm228_vm2, %v227_v62  }
  0x8c   :  { %v248_v63 = vpop.permute.xlu1 %247  }
  0x8d   :  { %349 = vst.msk [vmem:[%s533_s1 + $0x8] sm:$0xf] %vm228_vm2, %v248_v63   ;;  %350 = vst.msk [vmem:[%s533_s1 + $0xc] sm:$0xf0] %vm228_vm2, %v248_v63  }
  0x90   :  { %v237_v0 = vpop.permute.xlu0 %236  }
  0x91   :  { %348 = vst.msk [vmem:[%s533_s1 + $0x20] sm:$0xff] %vm228_vm2, %v237_v0  }
  0x94   :  { %v270_v1 = vpop.permute.xlu0 %269  }
  0x95   :  { %353 = vst.msk [vmem:[%s533_s1 + $0x18] sm:$0xf] %vm228_vm2, %v270_v1  }
  0x99   :  { %v261_v2 = vpop.permute.xlu1 %260  }
  0x9a   :  { %351 = vst.msk [vmem:[%s533_s1 + $0x28] sm:$0xf] %vm228_vm2, %v261_v2   ;;  %352 = vst.msk [vmem:[%s533_s1 + $0x10] sm:$0xf0] %vm228_vm2, %v261_v2  }

// kernel: decoder_forward.8
= control target key start
LH: loop header
LB: loop body
LE: loop exit
PB: predicated region body
PF: predicated region fallthrough
CT: control target
= control target key end

     0   :  { %s803_s27 = smov 0   ;;  %s805_s28 = smov 0   ;;  %s878_s0 = inlined_call_operand.vmem [shape: f32[2,8,32], index: 0, kind: input, shape index: {}]   ;;  %s879_s1 = inlined_call_operand.vmem [shape: f32[2,8,1], index: 1, kind: input, shape index: {}]   ;;  %s880_s2 = inlined_call_operand.vmem [shape: bf16[32,64], index: 2, kind: input, shape index: {}]   ;;  %s881_s3 = inlined_call_operand.vmem [shape: f32[1,64], index: 3, kind: input, shape index: {}]   ;;  %s882_s4 = inlined_call_operand.vmem [shape: bf16[64,32], index: 4, kind: input, shape index: {}]   ;;  %s883_s5 = inlined_call_operand.vmem [shape: f32[1,32], index: 5, kind: input, shape index: {}]   ;;  %s884_s6 = inlined_call_operand.vmem [shape: f32[1,32], index: 6, kind: input, shape index: {}]   ;;  %s885_s7 = inlined_call_operand.vmem [shape: f32[1,32], index: 7, kind: input, shape index: {}]   ;;  %s886_s8 = inlined_call_operand.vmem [shape: f32[2,8,32], index: 8, kind: output, shape index: {}]  }
   0x1   :  { %s807_s29 = smov 0  }
   0x2 LB: > { %s30_s30 = sadd.s32 1, %s749_s28  ;;  %p649_p0 = scmp.ge.s32.totalorder %s753_s29, 1  ;;  %s753_s29 = sphi %s807_s29, %s18_s29   ;;  %s749_s28 = sphi %s805_s28, %s888_s28   ;;  %s745_s27 = sphi %s803_s27, %s887_s27  }
   0x3   : > { %p32_p1 = scmp.ge.s32.totalorder %s30_s30, 2  ;;  %p294_p2 = scmp.lt.s32.totalorder %s753_s29, 3 }
   0x5   : > { %s890_s30 = smov (%p32_p1, %s30_s30), 0  ;;  %p295_p3 = pnand %p649_p0, %p294_p2 }
   0x6   : > { %p339_p4 = scmp.lt.s32.totalorder (!%p295_p3), %s745_s27, 1  ;;  %v723_v0 = vld [vmem:[%s880_s2] sm:$0xff] (!%p295_p3)   ;;  %v755_v1 = vmov (!%p295_p3), 0   ;;  %v756_v2 = vmov (!%p295_p3), 0.0   ;;  %v724_v4 = vld [vmem:[%s880_s2 + $0x8] sm:$0xff] (!%p295_p3)   ;;  %vm757_vm0 = vmmov (!%p295_p3), 0  }
   0x7   : > { %298 = sbr.rel (%p295_p3) target bundleno = 902 (0x386), region = 52  ;;  %722 = vset.pattern.permute.xlu0 (!%p295_p3), %v755_v1  ;;  %675 = vmatprep.subr.bf16.mxu0 (!%p295_p3), %v756_v2  ;;  %v725_v5 = vld [vmem:[%s882_s4] sm:$0xff] (!%p295_p3)   ;;  %v726_v6 = vld [vmem:[%s882_s4 + $0x8] sm:$0xff] (!%p295_p3)   ;;  %vm393_vm1 = vcmask (!%p295_p3), 261120   ;;  %v727_v11 = vld [vmem:[%s882_s4 + $0x10] sm:$0xff] (!%p295_p3)   ;;  %vm479_vm2 = vcmask (!%p295_p3), 523264  }
   0x8   : > { %676 = vmatpush3.bf16.msra.mxu0 (!%p295_p3), %v723_v0  ;;  %683 = vmatprep.subr.bf16.mxu1 (!%p295_p3), %v756_v2  ;;  %v728_v12 = vld [vmem:[%s882_s4 + $0x18] sm:$0xff] (!%p295_p3)   ;;  %v653_v13 = vld [vmem:[%s881_s3] ss:$0 sm:$0xff] (!%p295_p3) }
   0x9   : > { %677 = vmatprep.subr.bf16.mxu0 (!%p295_p3), %v756_v2  ;;  %679 = vmatprep.mubr.msk.bf16.mxu0 (!%p295_p3), %vm757_vm0, %v756_v2  ;;  %v657_v22 = vld [vmem:[%s883_s5] ss:$0 sm:$0xff] (!%p295_p3) }
   0xa   : > { %691 = vmatprep.mubr.msk.bf16.mxu1 (!%p295_p3), %vm757_vm0, %v756_v2  ;;  %684 = vmatpush3.bf16.msra.mxu1 (!%p295_p3), %v725_v5  ;;  %v663_v40 = vld [vmem:[%s884_s6] ss:$0 sm:$0xff] (!%p295_p3) }
   0xb   : > { %685 = vmatprep.subr.bf16.mxu1 (!%p295_p3), %v756_v2  ;;  %v664_v42 = vld [vmem:[%s885_s7] ss:$0 sm:$0xff] (!%p295_p3) }
   0xc   : > { %678 = vmatpush3.bf16.msra.mxu0 (!%p295_p3), %v724_v4 }
   0xe   : > { %s892_s27 = smov (!%p339_p4, %s745_s27), 1  ;;  %686 = vmatpush3.bf16.msra.mxu1 %v726_v6 }
   0xf   : > { %s824_s11 = sshll.u32 %s892_s27, 3  ;;  %687 = vmatprep.subr.bf16.mxu1 %v756_v2 }
  0x10   : > { %s352_s14 = scalar_lea.vmem %s879_s1, %s824_s11  ;;  %s345_s23 = scalar_lea.vmem %s878_s0, %s824_s11 }
  0x11   : > { %v362_v3 = vld [vmem:[%s352_s14] sm:$0xff]  ;;  %s359_s20 = scalar_lea.vmem %s886_s8, %s824_s11 }
  0x12   : > { %365 = vperm.xlu0 %722, %v362_v3   ;;  %v361_v7 = vld [vmem:[%s345_s23] sm:$0xff]  ;;  %688 = vmatpush3.bf16.msra.mxu1 %v727_v11 }
  0x13   : > { %689 = vmatprep.subr.bf16.mxu1 %v756_v2 }
  0x16   : > { %690 = vmatpush3.bf16.msra.mxu1 %v728_v12 }
  0x91   : > { %v366_v8 = vpop.permute.xlu0 %365 }
  0x92   : > { %v368_v9 = vmul.f32 %v366_v8, %v361_v7 }
  0x94   : > { %v369_v10 = vpack.c.bf16 %v368_v9, %v368_v9 }
  0x96   : > { %680 = vmatmul.mubr.msk.bf16.vlgmr.msra.gmra.mrb[0].mxu0 %vm393_vm1, %v369_v10 }
 0x169   : > { %v431_v14 = vpop.f32.mrb[0].mxu0 }
 0x16a   : > { %v432_v15 = vadd.f32 %v653_v13, %v431_v14  ;;  %v681_v16 = vpop.f32.mrb[1].mxu0 }
 0x16b   : > { %v434_v17 = vpop.f32.mrb[2].mxu0 }
 0x16c   : > { %v437_v18 = vmax.f32 %v432_v15, 0.0  ;;  %v682_v19 = vpop.f32.mrb[3].mxu0 }
 0x16e   : > { %v438_v20 = vmul.f32 %v437_v18, %v366_v8 }
 0x170   : > { %v439_v21 = vpack.c.bf16 %v438_v20, %v438_v20 }
 0x172   : > { %692 = vmatmul.mubr.msk.bf16.vlgmr.msra.gmra.mrb[0].mxu1 %vm479_vm2, %v439_v21 }
 0x245   : > { %v517_v23 = vpop.f32.mrb[0].mxu1 }
 0x246   : > { %v518_v24 = vadd.f32 %v657_v22, %v517_v23  ;;  %v693_v25 = vpop.f32.mrb[1].mxu1 }
 0x247   : > { %v520_v26 = vpop.f32.mrb[2].mxu1 }
 0x248   : > { %v523_v27 = vmul.f32 %v518_v24, %v366_v8  ;;  %v694_v28 = vpop.f32.mrb[3].mxu1 }
 0x24a   : > { %v524_v29 = vadd.f32 %v523_v27, %v361_v7 }
 0x24c   : > { %v525_v30 = vsel %vm393_vm1, %v524_v29, 0.0 }
 0x24d   : > { %526 = vadd.xlane.f32.xlu0 %v525_v30 }
 0x2da   : > { %v527_v31 = vpop.xlane.xlu0 %526 }
 0x2db   : > { %v529_v32 = vmul.f32 0.03125, %v527_v31 }
 0x2dd   : > { %v530_v33 = vsub.f32 %v524_v29, %v529_v32 }
 0x2df   : > { %v531_v34 = vmul.f32 %v530_v33, %v530_v33 }
 0x2e1   : > { %v532_v35 = vsel %vm393_vm1, %v531_v34, 0.0 }
 0x2e2   : > { %533 = vadd.xlane.f32.xlu1 %v532_v35 }
 0x36f   : > { %v534_v36 = vpop.xlane.xlu1 %533 }
 0x370   : > { %v535_v37 = vmul.f32 0.03125, %v534_v36 }
 0x372   : > { %v536_v38 = vadd.f32 0.0001, %v535_v37 }
 0x374   : > { %729 = vrsqrt.f32 %v536_v38 }
 0x37e   : > { %v730_v39 = vpop.eup %729 }
 0x37f   : > { %v538_v41 = vmul.f32 %v730_v39, %v530_v33 }
 0x381   : > { %v546_v43 = vmul.f32 %v663_v40, %v538_v41 }
 0x383   : > { %v554_v44 = vadd.f32 %v664_v42, %v546_v43 }
 0x385   : > { %555 = vst.msk [vmem:[%s359_s20] sm:$0xff] %vm393_vm1, %v554_v44 }
 0x386 PF: > { %s18_s29 = sadd.s32 1, %s753_s29   ;;  %s887_s27 = smov %s749_s28 }
 0x387   : > { %p15_p5 = scmp.ge.s32.totalorder %s18_s29, 4   ;;  %s888_s28 = smov %s890_s30 }
 0x389   :  { %17 = sbr.rel (!%p15_p5) target bundleno = 2 (0x2), region = 85 }

// kernel: decoder_forward.6
= control target key start
LH: loop header
LB: loop body
LE: loop exit
PB: predicated region body
PF: predicated region fallthrough
CT: control target
= control target key end

     0   :  { %s1221_s18 = smov 0   ;;  %s1346_s0 = inlined_call_operand.vmem [shape: f32[2,8,32], index: 0, kind: input, shape index: {}, may-alias: {0,1}]   ;;  %s1347_s1 = inlined_call_operand.vmem [shape: f32[2,8,32], index: 1, kind: input, shape index: {}, may-alias: {0,1}]   ;;  %s1348_s2 = inlined_call_operand.vmem [shape: f32[2,8,1], index: 2, kind: input, shape index: {}]   ;;  %s1349_s3 = inlined_call_operand.vmem [shape: f32[2,1,8], index: 3, kind: input, shape index: {}]   ;;  %s1350_s4 = inlined_call_operand.vmem [shape: bf16[32,96], index: 4, kind: input, shape index: {}]   ;;  %s1351_s5 = inlined_call_operand.vmem [shape: f32[1,96], index: 5, kind: input, shape index: {}]   ;;  %s1352_s6 = inlined_call_operand.vmem [shape: bf16[32,32], index: 6, kind: input, shape index: {}]   ;;  %s1353_s7 = inlined_call_operand.vmem [shape: f32[1,32], index: 7, kind: input, shape index: {}]   ;;  %s1354_s8 = inlined_call_operand.vmem [shape: f32[1,32], index: 8, kind: input, shape index: {}]   ;;  %s1355_s9 = inlined_call_operand.vmem [shape: f32[1,32], index: 9, kind: input, shape index: {}]   ;;  %s1356_s10 = inlined_call_operand.vmem [shape: f32[3,8,32], index: 10, kind: input, shape index: {}, may-alias: {10,11}]   ;;  %s1357_s11 = inlined_call_operand.vmem [shape: f32[3,8,32], index: 11, kind: input, shape index: {}, may-alias: {10,11}]   ;;  %s1358_s12 = inlined_call_operand.vmem [shape: f32[2,8,32], index: 12, kind: output, shape index: {}]  }
   0x1 LB: > { %s1015_s19 = sadd.s32 4294967295, %s1139_s18   ;;  %p1019_p0 = scmp.ge.s32.totalorder %s1139_s18, 1  ;;  %s1139_s18 = sphi %s1221_s18, %s22_s18  }
   0x2   : > { %p387_p1 = scmp.lt.s32.totalorder %s1139_s18, 3 }
   0x4   : > { %p388_p2 = pnand %p1019_p0, %p387_p1 }
   0x5   : > { %v1119_v0 = vld [vmem:[%s1350_s4] sm:$0xff] (!%p388_p2)   ;;  %v1141_v1 = vmov (!%p388_p2), 0.0   ;;  %v1120_v2 = vld [vmem:[%s1350_s4 + $0x8] sm:$0xff] (!%p388_p2)   ;;  %vm1142_vm0 = vmmov (!%p388_p2), 0   ;;  %p438_p3 = scmp.lt.s32.totalorder (!%p388_p2), %s1015_s19, 1  ;;  %vm483_vm1 = vcmask (!%p388_p2), 261120   ;;  %v584_v48 = vlaneseq (!%p388_p2) }
   0x6   : > { %391 = sbr.rel (%p388_p2) target bundleno = 2002 (0x7d2), region = 68  ;;  %1056 = vmatprep.subr.bf16.mxu0 (!%p388_p2), %v1141_v1  ;;  %1064 = vmatprep.subr.bf16.mxu1 (!%p388_p2), %v1141_v1  ;;  %v1022_v5 = vld [vmem:[%s1351_s5] ss:$0 sm:$0xff] (!%p388_p2)  ;;  %s1143_s1 = smov (!%p388_p2), 100   ;;  %vm547_vm2 = vcmask (!%p388_p2), 31744   ;;  %vm539_vm3 = vcmask (!%p388_p2), 228352  }
   0x7   : > { %1057 = vmatpush3.bf16.msra.mxu0 (!%p388_p2), %v1119_v0  ;;  %1060 = vmatprep.mubr.msk.bf16.mxu0 (!%p388_p2), %vm1142_vm0, %v1141_v1  ;;  %s1144_s30 = smov (!%p388_p2), 124   ;;  %s1145_s2 = smov (!%p388_p2), 68   ;;  %v554_v11 = vld [vmem:[%s1357_s11] sm:$0xff] (!%p388_p2)  ;;  %v1029_v14 = vld [vmem:[%s1357_s11 + $0x10] sm:$0xff] (!%p388_p2)  ;;  %v1028_v15 = vld [vmem:[%s1357_s11 + $0x8] sm:$0xff] (!%p388_p2)  ;;  %vm596_vm4 = vcmask (!%p388_p2), 130048  }
   0x8   : > { %1058 = vmatprep.subr.bf16.mxu0 (!%p388_p2), %v1141_v1  ;;  %1066 = vmatprep.mubr.msk.bf16.mxu1 (!%p388_p2), %vm1142_vm0, %v1141_v1  ;;  %s1146_s13 = smov (!%p388_p2), 92   ;;  %s1147_s15 = smov (!%p388_p2), 32   ;;  %v527_v28 = vld [vmem:[%s1356_s10] sm:$0xff] (!%p388_p2)  ;;  %v1026_v29 = vld [vmem:[%s1356_s10 + $0x8] sm:$0xff] (!%p388_p2)  ;;  %v1027_v34 = vld [vmem:[%s1356_s10 + $0x10] sm:$0xff] (!%p388_p2)  ;;  %v585_v49 = vshrl.u32 (!%p388_p2), %v584_v48, 7 }
   0x9   : > { %s1148_s22 = smov (!%p388_p2), 4   ;;  %s1149_s23 = smov (!%p388_p2), 28   ;;  %v587_v50 = vand.u32 (!%p388_p2), 127, %v584_v48  ;;  %vm644_vm6 = vcmask (!%p388_p2), 64512   ;;  %vm666_vm7 = vcmask (!%p388_p2), 1043456  }
   0xa   : > { %s1153_s3 = smov (!%p388_p2), 64   ;;  %s1154_s14 = smov (!%p388_p2), 48  }
   0xb   : > { %1059 = vmatpush3.bf16.msra.mxu0 (!%p388_p2), %v1120_v2  ;;  %vm588_vm5 = vcmp.ge.s32.totalorder (!%p388_p2), %v585_v49, %v587_v50  ;;  %s1155_s21 = smov (!%p388_p2), 16  }
   0xc   : > { %1070 = vmatprep.subr.bf16.mxu0 (!%p388_p2), %v1141_v1 }
   0xd   : > { %s1360_s19 = smov (!%p438_p3, %s1015_s19), 1 }
   0xe   : > { %s1020_s24 = sshll.u32 %s1360_s19, 3 }
   0xf   : > { %s441_s27 = scalar_lea.vmem %s1346_s0, %s1020_s24 }
  0x10   : > { %v1251_v3 = vld [vmem:[%s441_s27] sm:$0xff] }
  0x11   : > { %v459_v4 = vpack.c.bf16 %v1251_v3, %v1251_v3 }
  0x13   : > { %1061 = vmatmul.mubr.msk.bf16.vlgmr.msra.gmra.mrb[0].mxu0 %vm483_vm1, %v459_v4 }
  0x14   : > { %1072 = vmatprep.mubr.msk.bf16.mxu0 %vm1142_vm0, %v1141_v1 }
  0xe6   : > { %v521_v6 = vpop.f32.mrb[0].mxu0 }
  0xe7   : > { %v1261_v7 = vadd.f32 %v1022_v5, %v521_v6  ;;  %v1062_v8 = vpop.f32.mrb[1].mxu0 }
  0xe8   : > { %v524_v9 = vpop.f32.mrb[2].mxu0 }
  0xe9   : > { %541 = vrot.lane.b32.xlu1 %v1261_v7, %s1143_s1  ;;  %533 = vrot.lane.b32.xlu0 %v1261_v7, %s1144_s30  ;;  %v1063_v10 = vpop.f32.mrb[3].mxu0  ;;  %v549_v36 = vmul.f32 %v527_v28, %v1261_v7  ;;  %s1150_s30 = smov 80   ;;  %v592_v63 = vpack.c.bf16 %v1261_v7, %v1261_v7 }
  0xed   : > { %563 = vrot.lane.b32.xlu1 %v1261_v7, %s1145_s2  ;;  %559 = vrot.lane.b32.xlu0 %v1261_v7, %s1146_s13  ;;  %s1151_s2 = smov 96   ;;  %s1152_s13 = smov 112  }
  0xf1   : > { %568 = vrot.lane.b32.xlu0 %v554_v11, %s1147_s15 }
 0x15b   : > { %v542_v12 = vpop.permute.xlu1 %541  ;;  %v534_v13 = vpop.permute.xlu0 %533 }
 0x15f   : > { %v564_v16 = vpop.permute.xlu1 %563  ;;  %v560_v17 = vpop.permute.xlu0 %559 }
 0x160   : > { %v566_v18 = vsel %vm547_vm2, %v564_v16, %v542_v12  ;;  %v562_v19 = vsel %vm539_vm3, %v560_v17, %v534_v13 }
 0x161   : > { %v578_v20 = vmul.f32 %v1029_v14, %v566_v18  ;;  %v572_v21 = vmul.f32 %v1028_v15, %v562_v19 }
 0x163   : > { %580 = vrot.lane.b32.xlu0 %v578_v20, %s1147_s15  ;;  %574 = vrot.lane.b32.xlu1 %v572_v21, %s1147_s15  ;;  %v569_v22 = vpop.permute.xlu0 %568 }
 0x164   : > { %v571_v23 = vmul.f32 %v569_v22, %v1261_v7 }
 0x167   : > { %544 = vrot.lane.b32.xlu0 %v1261_v7, %s1148_s22  ;;  %536 = vrot.lane.b32.xlu1 %v1261_v7, %s1149_s23 }
 0x1d5   : > { %v575_v24 = vpop.permute.xlu1 %574  ;;  %v581_v25 = vpop.permute.xlu0 %580 }
 0x1d6   : > { %v577_v26 = vadd.f32 %v575_v24, %v571_v23 }
 0x1d8   : > { %v583_v27 = vadd.f32 %v581_v25, %v577_v26 }
 0x1d9   : > { %v537_v30 = vpop.permute.xlu1 %536  ;;  %v545_v31 = vpop.permute.xlu0 %544 }
 0x1da   : > { %v591_v32 = vpack.c.bf16 %v583_v27, %v583_v27  ;;  %v540_v33 = vsel %vm539_vm3, %v534_v13, %v537_v30  ;;  %v548_v35 = vsel %vm547_vm2, %v542_v12, %v545_v31  ;;  %v1121_v30 = vld [vmem:[%s1352_s6] sm:$0xff]   ;;  %v1122_v31 = vld [vmem:[%s1352_s6 + $0x8] sm:$0xff]  }
 0x1db   : > { %v550_v37 = vmul.f32 %v1026_v29, %v540_v33  ;;  %v552_v39 = vmul.f32 %v1027_v34, %v548_v35 }
 0x1dc   : > { %713 = vrot.lane.b32.xlu0 %v591_v32, %s1150_s30  ;;  %594 = vrot.lane.b32.xlu1 %v591_v32, %s1151_s2  ;;  %s456_s30 = scalar_lea.vmem %s1358_s12, %s1020_s24 }
 0x1dd   : > { %v551_v38 = vadd.f32 %v550_v37, %v549_v36 }
 0x1df   : > { %v553_v40 = vadd.f32 %v552_v39, %v551_v38 }
 0x1e1   : > { %v589_v41 = vmul.f32 0.25, %v553_v40 }
 0x1e3   : > { %v590_v42 = vpack.c.bf16 %v589_v41, %v589_v41 }
 0x1e5   : > { %711 = vrot.lane.b32.xlu1 %v590_v42, %s1152_s13 }
 0x24e   : > { %v595_v43 = vpop.permute.xlu1 %594  ;;  %v714_v45 = vpop.permute.xlu0 %713 }
 0x24f   : > { %v601_v44 = vsel %vm596_vm4, %v595_v43, 0  ;;  %v719_v46 = vsel %vm596_vm4, %v714_v45, 0 }
 0x250   : > { %1065 = vmatpush3.bf16.xpose.msra.mxu1 %v601_v44 }
 0x251   : > { %1076 = vmatprep.subr.bf16.mxu1 %v1141_v1 }
 0x257   : > { %1067 = vmatmul.mubr.msk.bf16.vlgmr.msra.gmra.mrb[0].mxu1 %vm596_vm4, %v590_v42  ;;  %v712_v47 = vpop.permute.xlu1 %711 }
 0x258   : > { %1077 = vmatpush3.bf16.xpose.msra.mxu1 %v719_v46  ;;  %1078 = vmatprep.mubr.msk.bf16.mxu1 %vm1142_vm0, %v1141_v1 }
 0x259   : > { %1088 = vmatprep.subr.bf16.mxu1 %v1141_v1 }
 0x25f   : > { %1079 = vmatmul.mubr.msk.bf16.vlgmr.msra.gmra.mrb[4].mxu1 %vm596_vm4, %v712_v47 }
 0x260   : > { %1092 = vmatprep.mubr.msk.bf16.mxu1 %vm1142_vm0, %v1141_v1  ;;  %1089 = vmatpush3.bf16.msra.mxu1 %v1121_v30 }
 0x261   : > { %1090 = vmatprep.subr.bf16.mxu1 %v1141_v1 }
 0x264   : > { %1091 = vmatpush3.bf16.msra.mxu1 %v1122_v31 }
 0x32a   : > { %v637_v51 = vpop.f32.mrb[0].mxu1 }
 0x32b   : > { %v643_v52 = vsel %vm588_vm5, %v637_v51, -10000.0  ;;  %v1068_v53 = vpop.f32.mrb[1].mxu1 }
 0x32c   : > { %v640_v54 = vpop.f32.mrb[2].mxu1  ;;  %v645_v55 = vsel %vm644_vm6, %v643_v52, -inf }
 0x32d   : > { %646 = vmax.xlane.f32.xlu0 %v645_v55  ;;  %v1069_v56 = vpop.f32.mrb[3].mxu1 }
 0x332   : > { %v755_v57 = vpop.f32.mrb[4].mxu1 }
 0x333   : > { %v761_v58 = vsel %vm588_vm5, %v755_v57, -10000.0  ;;  %v1080_v59 = vpop.f32.mrb[5].mxu1 }
 0x334   : > { %v758_v60 = vpop.f32.mrb[6].mxu1  ;;  %v762_v61 = vsel %vm644_vm6, %v761_v58, -inf }
 0x335   : > { %763 = vmax.xlane.f32.xlu1 %v762_v61  ;;  %v1081_v62 = vpop.f32.mrb[7].mxu1  ;;  %v1039_v60 = vld [vmem:[%s1355_s9] ss:$0 sm:$0xff] }
 0x346   : > { %661 = vrot.lane.b32.xlu1 %v592_v63, %s1153_s3 }
 0x3ba   : > { %v647_v0 = vpop.xlane.xlu0 %646 }
 0x3bb   : > { %v648_v2 = vsub.f32 %v643_v52, %v647_v0 }
 0x3bd   : > { %v649_v4 = vmul.f32 1.442695, %v648_v2 }
 0x3bf   : > { %1123 = vpow2.f32 %v649_v4 }
 0x3c2   : > { %v764_v5 = vpop.xlane.xlu1 %763 }
 0x3c3   : > { %v765_v6 = vsub.f32 %v761_v58, %v764_v5 }
 0x3c5   : > { %v766_v8 = vmul.f32 1.442695, %v765_v6 }
 0x3c6   : > { %v662_v9 = vpop.permute.xlu1 %661 }
 0x3c7   : > { %1125 = vpow2.f32 %v766_v8  ;;  %v668_v10 = vsel %vm666_vm7, %v662_v9, 0 }
 0x3c8   : > { %1071 = vmatpush3.bf16.msra.mxu0 %v668_v10 }
 0x3c9   : > { %v1124_v11 = vpop.eup %1123  ;;  %1082 = vmatprep.subr.bf16.mxu0 %v1141_v1 }
 0x3ca   : > { %v651_v7 = vsel %vm644_vm6, %v1124_v11, 0.0 }
 0x3cb   : > { %652 = vadd.xlane.f32.xlu0 %v651_v7 }
 0x3d1   : > { %v1126_v12 = vpop.eup %1125 }
 0x3d2   : > { %v768_v13 = vsel %vm644_vm6, %v1126_v12, 0.0 }
 0x3d3   : > { %769 = vadd.xlane.f32.xlu0 %v768_v13 }
 0x3e9   : > { %777 = vrot.lane.b32.xlu0 %v592_v63, %s1154_s14 }
 0x458   : > { %v653_v14 = vpop.xlane.xlu0 %652 }
 0x459   : > { %1127 = vrcp.f32 %v653_v14 }
 0x460   : > { %v770_v15 = vpop.xlane.xlu0 %769 }
 0x461   : > { %1129 = vrcp.f32 %v770_v15 }
 0x463   : > { %v1128_v16 = vpop.eup %1127 }
 0x464   : > { %v655_v17 = vmul.f32 %v1128_v16, %v653_v14  ;;  %v778_v22 = vpop.permute.xlu0 %777 }
 0x465   : > { %v783_v26 = vsel %vm666_vm7, %v778_v22, 0 }
 0x466   : > { %v656_v18 = vsub.f32 2.0, %v655_v17 }
 0x468   : > { %v657_v19 = vmul.f32 %v1128_v16, %v656_v18 }
 0x46a   : > { %v658_v20 = vmul.f32 %v1124_v11, %v657_v19 }
 0x46b   : > { %v1130_v21 = vpop.eup %1129 }
 0x46c   : > { %v659_v23 = vpack.c.bf16 %v658_v20, %v658_v20  ;;  %v772_v24 = vmul.f32 %v1130_v21, %v770_v15 }
 0x46e   : > { %v773_v25 = vsub.f32 2.0, %v772_v24  ;;  %1073 = vmatmul.mubr.msk.bf16.vlgmr.msra.gmra.mrb[4].mxu0 %vm644_vm6, %v659_v23 }
 0x46f   : > { %1083 = vmatpush3.bf16.msra.mxu0 %v783_v26  ;;  %1084 = vmatprep.mubr.msk.bf16.mxu0 %vm1142_vm0, %v1141_v1  ;;  %v1034_v1 = vld [vmem:[%s1353_s7] ss:$0 sm:$0xff] }
 0x470   : > { %v774_v27 = vmul.f32 %v1130_v21, %v773_v25 }
 0x472   : > { %v775_v28 = vmul.f32 %v1126_v12, %v774_v27 }
 0x474   : > { %v776_v29 = vpack.c.bf16 %v775_v28, %v775_v28 }
 0x476   : > { %1085 = vmatmul.mubr.msk.bf16.vlgmr.msra.gmra.mrb[8].mxu0 %vm644_vm6, %v776_v29 }
 0x541   : > { %v704_v32 = vpop.f32.mrb[4].mxu0 }
 0x542   : > { %v1074_v33 = vpop.f32.mrb[5].mxu0 }
 0x543   : > { %v707_v34 = vpop.f32.mrb[6].mxu0 }
 0x544   : > { %v1075_v35 = vpop.f32.mrb[7].mxu0 }
 0x549   : > { %v819_v36 = vpop.f32.mrb[8].mxu0 }
 0x54a   : > { %826 = vrot.lane.b32.xlu1 %v819_v36, %s1155_s21  ;;  %v1086_v37 = vpop.f32.mrb[9].mxu0 }
 0x54b   : > { %v822_v38 = vpop.f32.mrb[10].mxu0 }
 0x54c   : > { %v1087_v39 = vpop.f32.mrb[11].mxu0 }
 0x5bc   : > { %v827_v40 = vpop.permute.xlu1 %826 }
 0x5bd   : > { %v829_v41 = vsel %vm596_vm4, %v704_v32, %v827_v40 }
 0x5be   : > { %v830_v42 = vpack.c.bf16 %v829_v41, %v829_v41 }
 0x5c0   : > { %1093 = vmatmul.mubr.msk.bf16.vlgmr.msra.gmra.mrb[8].mxu1 %vm483_vm1, %v830_v42 }
 0x693   : > { %v891_v43 = vpop.f32.mrb[8].mxu1 }
 0x694   : > { %v892_v44 = vadd.f32 %v1034_v1, %v891_v43  ;;  %v1094_v45 = vpop.f32.mrb[9].mxu1 }
 0x695   : > { %v894_v46 = vpop.f32.mrb[10].mxu1 }
 0x696   : > { %v1095_v47 = vpop.f32.mrb[11].mxu1  ;;  %v897_v48 = vadd.f32 %v892_v44, %v1251_v3  ;;  %v1038_v3 = vld [vmem:[%s1354_s8] ss:$0 sm:$0xff] }
 0x698   : > { %v898_v49 = vsel %vm483_vm1, %v897_v48, 0.0 }
 0x699   : > { %899 = vadd.xlane.f32.xlu1 %v898_v49 }
 0x726   : > { %v900_v50 = vpop.xlane.xlu1 %899 }
 0x727   : > { %v902_v51 = vmul.f32 0.03125, %v900_v50 }
 0x729   : > { %v903_v52 = vsub.f32 %v897_v48, %v902_v51 }
 0x72b   : > { %v904_v53 = vmul.f32 %v903_v52, %v903_v52 }
 0x72d   : > { %v905_v54 = vsel %vm483_vm1, %v904_v53, 0.0 }
 0x72e   : > { %906 = vadd.xlane.f32.xlu0 %v905_v54 }
 0x7bb   : > { %v907_v55 = vpop.xlane.xlu0 %906 }
 0x7bc   : > { %v908_v56 = vmul.f32 0.03125, %v907_v55 }
 0x7be   : > { %v909_v57 = vadd.f32 0.0001, %v908_v56 }
 0x7c0   : > { %1131 = vrsqrt.f32 %v909_v57 }
 0x7ca   : > { %v1132_v58 = vpop.eup %1131 }
 0x7cb   : > { %v911_v59 = vmul.f32 %v1132_v58, %v903_v52 }
 0x7cd   : > { %v919_v61 = vmul.f32 %v1038_v3, %v911_v59 }
 0x7cf   : > { %v927_v62 = vadd.f32 %v1039_v60, %v919_v61 }
 0x7d1   : > { %928 = vst.msk [vmem:[%s456_s30] sm:$0xff] %vm483_vm1, %v927_v62 }
 0x7d2 PF: > { %s22_s18 = sadd.s32 1, %s1139_s18  }
 0x7d3   : > { %p19_p4 = scmp.ge.s32.totalorder %s22_s18, 4  }
 0x7d5   :  { %21 = sbr.rel (!%p19_p4) target bundleno = 1 (0x1), region = 111 }

// kernel: decoder_forward.7
= control target key start
LH: loop header
LB: loop body
LE: loop exit
PB: predicated region body
PF: predicated region fallthrough
CT: control target
= control target key end

     0   :  { %s1319_s21 = smov 0   ;;  %s1468_s0 = inlined_call_operand.vmem [shape: f32[2,8,32], index: 0, kind: input, shape index: {}]   ;;  %s1469_s1 = inlined_call_operand.vmem [shape: f32[2,12,32], index: 1, kind: input, shape index: {}]   ;;  %s1470_s2 = inlined_call_operand.vmem [shape: f32[2,8,1], index: 2, kind: input, shape index: {}]   ;;  %s1471_s3 = inlined_call_operand.vmem [shape: f32[2,1,12], index: 3, kind: input, shape index: {}]   ;;  %s1472_s4 = inlined_call_operand.vmem [shape: bf16[32,96], index: 4, kind: input, shape index: {}]   ;;  %s1473_s5 = inlined_call_operand.vmem [shape: f32[1,96], index: 5, kind: input, shape index: {}]   ;;  %s1474_s6 = inlined_call_operand.vmem [shape: bf16[32,32], index: 6, kind: input, shape index: {}]   ;;  %s1475_s7 = inlined_call_operand.vmem [shape: f32[1,32], index: 7, kind: input, shape index: {}]   ;;  %s1476_s8 = inlined_call_operand.vmem [shape: f32[1,32], index: 8, kind: input, shape index: {}]   ;;  %s1477_s9 = inlined_call_operand.vmem [shape: f32[1,32], index: 9, kind: input, shape index: {}]   ;;  %s1478_s10 = inlined_call_operand.vmem [shape: f32[3,8,32], index: 10, kind: input, shape index: {}]   ;;  %s1479_s11 = inlined_call_operand.vmem [shape: f32[3,12,32], index: 11, kind: input, shape index: {}]   ;;  %s1480_s12 = inlined_call_operand.vmem [shape: f32[2,8,32], index: 12, kind: output, shape index: {}]  }
   0x1 LB: > { %s1100_s22 = sadd.s32 4294967295, %s1241_s21   ;;  %p1104_p0 = scmp.ge.s32.totalorder %s1241_s21, 1  ;;  %s1241_s21 = sphi %s1319_s21, %s22_s21  }
   0x2   : > { %p388_p1 = scmp.lt.s32.totalorder %s1241_s21, 3 }
   0x4   : > { %p389_p2 = pnand %p1104_p0, %p388_p1 }
   0x5   : > { %v1221_v0 = vld [vmem:[%s1472_s4] sm:$0xff] (!%p389_p2)   ;;  %s1243_s25 = smov (!%p389_p2), 96   ;;  %v1222_v1 = vld [vmem:[%s1472_s4 + $0x8] sm:$0xff] (!%p389_p2)   ;;  %v1244_v2 = vmov (!%p389_p2), 0.0   ;;  %p440_p3 = scmp.lt.s32.totalorder (!%p389_p2), %s1100_s22, 1  ;;  %vm1245_vm0 = vmmov (!%p389_p2), 0  }
   0x6   : > { %392 = sbr.rel (%p389_p2) target bundleno = 1998 (0x7ce), region = 68  ;;  %533 = vrot.lane.b32.xlu0 (!%p389_p2), %v1221_v0, %s1243_s25  ;;  %1160 = vmatprep.subr.bf16.mxu1 (!%p389_p2), %v1244_v2  ;;  %v1110_v3 = vld [vmem:[%s1473_s5] ss:$0 sm:$0xff] (!%p389_p2)  ;;  %vm489_vm1 = vcmask (!%p389_p2), 261120   ;;  %s1246_s20 = smov (!%p389_p2), 124   ;;  %v1250_v24 = vmov (!%p389_p2), 0  }
   0x7   : > { %1164 = vmatprep.mubr.msk.bf16.mxu1 (!%p389_p2), %vm1245_vm0, %v1244_v2  ;;  %1152 = vmatprep.subr.bf16.mxu0 (!%p389_p2), %v1244_v2  ;;  %s1247_s23 = smov (!%p389_p2), 28   ;;  %s1248_s24 = smov (!%p389_p2), 100   ;;  %vm598_vm2 = vcmask (!%p389_p2), 228352   ;;  %v1117_v30 = vld [vmem:[%s1479_s11 + $0x10] sm:$0xff] (!%p389_p2)  ;;  %v1118_v32 = vld [vmem:[%s1479_s11 + $0x18] sm:$0xf] (!%p389_p2) }
   0x8   : > { %1153 = vmatpush3.bf16.msra.mxu0 (!%p389_p2), %v1221_v0  ;;  %1156 = vmatprep.mubr.msk.bf16.mxu0 (!%p389_p2), %vm1245_vm0, %v1244_v2  ;;  %s1249_s26 = smov (!%p389_p2), 4   ;;  %vm606_vm3 = vcmask (!%p389_p2), 31744   ;;  %v613_v35 = vld [vmem:[%s1479_s11] sm:$0xff] (!%p389_p2)  ;;  %v614_v36 = vld [vmem:[%s1479_s11 + $0x8] sm:$0xf] (!%p389_p2)  ;;  %vm680_vm4 = vcmask (!%p389_p2), 130048  }
   0x9   : > { %1154 = vmatprep.subr.bf16.mxu0 (!%p389_p2), %v1244_v2  ;;  %539 = vrot.lane.b32.xlu1 (!%p389_p2), %v1110_v3, %s1243_s25  ;;  %v1119_v37 = vld [vmem:[%s1479_s11 + $0x20] sm:$0xff] (!%p389_p2)  ;;  %v1120_v42 = vld [vmem:[%s1479_s11 + $0x28] sm:$0xf] (!%p389_p2)  ;;  %v1116_v60 = vld [vmem:[%s1478_s10 + $0x10] sm:$0xff] (!%p389_p2)  ;;  %s1251_s17 = smov (!%p389_p2), 112   ;;  %vm728_vm6 = vcmask (!%p389_p2), 97280  }
   0xa   : > { %535 = vrot.lane.b32.xlu0 (!%p389_p2), %v1222_v1, %s1243_s25  ;;  %1219 = vset.pattern.permute.xlu1 (!%p389_p2), %v1250_v24  ;;  %v1115_v52 = vld [vmem:[%s1478_s10 + $0x8] sm:$0xff] (!%p389_p2)  ;;  %v586_v56 = vld [vmem:[%s1478_s10] sm:$0xff] (!%p389_p2)  ;;  %vm750_vm7 = vcmask (!%p389_p2), 1045504   ;;  %s1253_s27 = smov (!%p389_p2), 16  }
   0xb   : > { %1220 = vset.pattern.permute.xlu0 (!%p389_p2), %v1250_v24 }
   0xc   : > { %1155 = vmatpush3.bf16.msra.mxu0 (!%p389_p2), %v1222_v1 }
   0xd   : > { %s1482_s22 = smov (!%p440_p3, %s1100_s22), 1  ;;  %1168 = vmatprep.subr.bf16.mxu0 %v1244_v2 }
   0xe   : > { %s1349_s30 = sshll.u32 %s1482_s22, 3  ;;  %s1134_s16 = sshll.u32 %s1482_s22, 4 }
   0xf   : > { %s443_s15 = scalar_lea.vmem %s1468_s0, %s1349_s30  ;;  %s448_s19 = scalar_lea.vmem %s1469_s1, %s1134_s16 }
  0x10   : > { %v1355_v4 = vld [vmem:[%s443_s15] sm:$0xff]  ;;  %v464_v8 = vld [vmem:[%s448_s19 + $0x8] sm:$0xf]  ;;  %s452_s14 = scalar_lea.vmem %s1470_s2, %s1349_s30 }
  0x11   : > { %v462_v5 = vpack.c.bf16 %v1355_v4, %v1355_v4  ;;  %v463_v7 = vld [vmem:[%s448_s19] sm:$0xff]  ;;  %s459_s19 = scalar_lea.vmem %s1480_s12, %s1349_s30 }
  0x12   : > { %v465_v10 = vpack.c.bf16 %v464_v8, %v463_v7 }
  0x13   : > { %1157 = vmatmul.mubr.msk.bf16.vlgmr.msra.gmra.mrb[0].mxu0 %vm489_vm1, %v462_v5 }
  0x14   : > { %1170 = vmatprep.mubr.msk.bf16.mxu0 %vm1245_vm0, %v1244_v2 }
  0x78   : > { %v534_v6 = vpop.permute.xlu0 %533 }
  0x79   : > { %1161 = vmatpush3.bf16.msra.mxu1 %v534_v6 }
  0x7a   : > { %1162 = vmatprep.subr.bf16.mxu1 %v1244_v2 }
  0x7b   : > { %v540_v15 = vpop.permute.xlu1 %539 }
  0x7c   : > { %v536_v9 = vpop.permute.xlu0 %535 }
  0x7d   : > { %1163 = vmatpush3.bf16.msra.mxu1 %v536_v9 }
  0x7e   : > { %1174 = vmatprep.subr.bf16.mxu1 %v1244_v2 }
  0x80   : > { %1165 = vmatmul.mubr.msk.bf16.vlgmr.msra.gmra.mrb[0].mxu1 %vm489_vm1, %v465_v10 }
  0x81   : > { %1176 = vmatprep.mubr.msk.bf16.mxu1 %vm1245_vm0, %v1244_v2 }
  0xe6   : > { %v527_v11 = vpop.f32.mrb[0].mxu0 }
  0xe7   : > { %v1158_v12 = vpop.f32.mrb[1].mxu0  ;;  %v528_v23 = vadd.f32 %v1110_v3, %v527_v11  ;;  %v661_v3 = vld [vmem:[%s452_s14] sm:$0xff] }
  0xe8   : > { %v530_v13 = vpop.f32.mrb[2].mxu0 }
  0xe9   : > { %v1159_v14 = vpop.f32.mrb[3].mxu0  ;;  %v608_v61 = vmul.f32 %v586_v56, %v528_v23  ;;  %v1223_v56 = vld [vmem:[%s1474_s6] sm:$0xff]  }
 0x153   : > { %v579_v16 = vpop.f32.mrb[0].mxu1 }
 0x154   : > { %v580_v17 = vadd.f32 %v579_v16, %v540_v15  ;;  %v1166_v18 = vpop.f32.mrb[1].mxu1 }
 0x155   : > { %v582_v19 = vpop.f32.mrb[2].mxu1 }
 0x156   : > { %v583_v20 = vadd.f32 %v582_v19, %v540_v15  ;;  %623 = vrot.lane.b32.xlu1 %v580_v17, %s1246_s20  ;;  %v1167_v21 = vpop.f32.mrb[3].mxu1  ;;  %v651_v43 = vmul.f32 %v613_v35, %v580_v17 }
 0x158   : > { %625 = vrot.lane.b32.xlu0 %v583_v20, %s1246_s20  ;;  %v1372_v22 = vpack.c.bf16 %v583_v20, %v580_v17  ;;  %v652_v44 = vmul.f32 %v614_v36, %v583_v20 }
 0x15a   : > { %629 = vrot.lane.b32.xlu1 %v580_v17, %s1247_s23 }
 0x15c   : > { %631 = vrot.lane.b32.xlu0 %v583_v20, %s1247_s23 }
 0x15e   : > { %637 = vrot.lane.b32.xlu1 %v580_v17, %s1248_s24 }
 0x160   : > { %639 = vrot.lane.b32.xlu0 %v583_v20, %s1248_s24 }
 0x162   : > { %643 = vrot.lane.b32.xlu1 %v580_v17, %s1249_s26 }
 0x164   : > { %645 = vrot.lane.b32.xlu0 %v583_v20, %s1249_s26 }
 0x166   : > { %592 = vrot.lane.b32.xlu1 %v528_v23, %s1246_s20  ;;  %s455_s20 = scalar_lea.vmem %s1471_s3, %s1482_s22  ;;  %s1252_s22 = smov 80  }
 0x167   : > { %v1121_v13 = vld [vmem:[%s455_s20] ss:$0 sm:$0xff] }
 0x168   : > { %595 = vrot.lane.b32.xlu0 %v528_v23, %s1247_s23 }
 0x16a   : > { %600 = vrot.lane.b32.xlu1 %v528_v23, %s1248_s24 }
 0x16c   : > { %603 = vrot.lane.b32.xlu0 %v528_v23, %s1249_s26 }
 0x1c8   : > { %v624_v25 = vpop.permute.xlu1 %623 }
 0x1ca   : > { %v626_v26 = vpop.permute.xlu0 %625 }
 0x1cc   : > { %v630_v27 = vpop.permute.xlu1 %629 }
 0x1cd   : > { %v635_v31 = vsel %vm598_vm2, %v624_v25, %v630_v27 }
 0x1ce   : > { %v632_v28 = vpop.permute.xlu0 %631  ;;  %v653_v38 = vmul.f32 %v1117_v30, %v635_v31 }
 0x1cf   : > { %v636_v33 = vsel %vm598_vm2, %v626_v26, %v632_v28 }
 0x1d0   : > { %v638_v29 = vpop.permute.xlu1 %637  ;;  %v654_v39 = vmul.f32 %v1118_v32, %v636_v33  ;;  %v655_v48 = vadd.f32 %v653_v38, %v651_v43 }
 0x1d2   : > { %v640_v34 = vpop.permute.xlu0 %639  ;;  %v656_v49 = vadd.f32 %v654_v39, %v652_v44 }
 0x1d4   : > { %v644_v40 = vpop.permute.xlu1 %643 }
 0x1d5   : > { %v649_v41 = vsel %vm606_vm3, %v638_v29, %v644_v40 }
 0x1d6   : > { %v657_v45 = vmul.f32 %v1119_v37, %v649_v41  ;;  %v646_v46 = vpop.permute.xlu0 %645 }
 0x1d7   : > { %v650_v47 = vsel %vm606_vm3, %v640_v34, %v646_v46 }
 0x1d8   : > { %v658_v50 = vmul.f32 %v1120_v42, %v650_v47  ;;  %v593_v51 = vpop.permute.xlu1 %592  ;;  %v659_v53 = vadd.f32 %v657_v45, %v655_v48 }
 0x1da   : > { %v660_v54 = vadd.f32 %v658_v50, %v656_v49  ;;  %v596_v55 = vpop.permute.xlu0 %595 }
 0x1db   : > { %v599_v57 = vsel %vm598_vm2, %v593_v51, %v596_v55 }
 0x1dc   : > { %v609_v58 = vmul.f32 %v1115_v52, %v599_v57  ;;  %v678_v59 = vpack.c.bf16 %v660_v54, %v659_v53  ;;  %v601_v62 = vpop.permute.xlu1 %600  ;;  %v1224_v57 = vld [vmem:[%s1474_s6 + $0x8] sm:$0xff]  }
 0x1de   : > { %v604_v63 = vpop.permute.xlu0 %603  ;;  %798 = vrot.lane.b32.xlu1 %v678_v59, %s1251_s17  ;;  %v685_v0 = vsel %vm680_vm4, %v678_v59, 0  ;;  %v610_v5 = vadd.f32 %v609_v58, %v608_v61 }
 0x1df   : > { %v607_v1 = vsel %vm606_vm3, %v601_v62, %v604_v63  ;;  %1169 = vmatpush3.bf16.xpose.msra.mxu0 %v685_v0 }
 0x1e0   : > { %v611_v6 = vmul.f32 %v1116_v60, %v607_v1  ;;  %1180 = vmatprep.subr.bf16.mxu0 %v1244_v2 }
 0x1e2   : > { %v612_v7 = vadd.f32 %v611_v6, %v610_v5  ;;  %665 = vperm.xlu1 %1219, %v661_v3  }
 0x1e4   : > { %v676_v8 = vmul.f32 0.25, %v612_v7 }
 0x1e6   : > { %v677_v9 = vpack.c.bf16 %v676_v8, %v676_v8 }
 0x1e8   : > { %795 = vrot.lane.b32.xlu0 %v677_v9, %s1251_s17  ;;  %1171 = vmatmul.mubr.msk.bf16.vlgmr.msra.gmra.mrb[4].mxu0 %vm680_vm4, %v677_v9 }
 0x1e9   : > { %1182 = vmatprep.mubr.msk.bf16.mxu0 %vm1245_vm0, %v1244_v2 }
 0x250   : > { %v799_v10 = vpop.permute.xlu1 %798 }
 0x251   : > { %v804_v11 = vsel %vm680_vm4, %v799_v10, 0 }
 0x252   : > { %1181 = vmatpush3.bf16.xpose.msra.mxu0 %v804_v11 }
 0x253   : > { %1192 = vmatprep.subr.bf16.mxu0 %v1244_v2 }
 0x25a   : > { %v796_v12 = vpop.permute.xlu0 %795 }
 0x25b   : > { %1183 = vmatmul.mubr.msk.bf16.vlgmr.msra.gmra.mrb[8].mxu0 %vm680_vm4, %v796_v12 }
 0x25c   : > { %1196 = vmatprep.mubr.msk.bf16.mxu0 %vm1245_vm0, %v1244_v2  ;;  %1193 = vmatpush3.bf16.msra.mxu0 %v1223_v56 }
 0x25d   : > { %1194 = vmatprep.subr.bf16.mxu0 %v1244_v2 }
 0x260   : > { %1195 = vmatpush3.bf16.msra.mxu0 %v1224_v57 }
 0x261   : > { %v666_v14 = vpop.permute.xlu1 %665 }
 0x262   : > { %v674_v15 = vmul.f32 %v1121_v13, %v666_v14 }
 0x264   : > { %vm675_vm5 = vcmp.gt.f32.partialorder %v674_v15, 0.5 }
 0x2bb   : > { %v721_v16 = vpop.f32.mrb[4].mxu0 }
 0x2bc   : > { %v727_v17 = vsel %vm675_vm5, %v721_v16, -10000.0  ;;  %v1172_v18 = vpop.f32.mrb[5].mxu0 }
 0x2bd   : > { %v724_v19 = vpop.f32.mrb[6].mxu0  ;;  %v729_v20 = vsel %vm728_vm6, %v727_v17, -inf }
 0x2be   : > { %730 = vmax.xlane.f32.xlu0 %v729_v20  ;;  %v1173_v21 = vpop.f32.mrb[7].mxu0 }
 0x32e   : > { %v840_v23 = vpop.f32.mrb[8].mxu0 }
 0x32f   : > { %v846_v24 = vsel %vm675_vm5, %v840_v23, -10000.0  ;;  %v1184_v25 = vpop.f32.mrb[9].mxu0 }
 0x330   : > { %v843_v26 = vpop.f32.mrb[10].mxu0  ;;  %v847_v27 = vsel %vm728_vm6, %v846_v24, -inf  ;;  %v1131_v25 = vld [vmem:[%s1477_s9] ss:$0 sm:$0xff] }
 0x331   : > { %848 = vmax.xlane.f32.xlu1 %v847_v27  ;;  %v1185_v28 = vpop.f32.mrb[11].mxu0 }
 0x342   : > { %745 = vrot.lane.b32.xlu1 %v1372_v22, %s1243_s25 }
 0x34b   : > { %v731_v29 = vpop.xlane.xlu0 %730 }
 0x34c   : > { %v732_v30 = vsub.f32 %v727_v17, %v731_v29 }
 0x34e   : > { %v733_v31 = vmul.f32 1.442695, %v732_v30 }
 0x350   : > { %1225 = vpow2.f32 %v733_v31 }
 0x35a   : > { %v1226_v32 = vpop.eup %1225 }
 0x35b   : > { %v735_v33 = vsel %vm728_vm6, %v1226_v32, 0.0 }
 0x35c   : > { %736 = vadd.xlane.f32.xlu0 %v735_v33 }
 0x3be   : > { %v849_v34 = vpop.xlane.xlu1 %848 }
 0x3bf   : > { %v850_v35 = vsub.f32 %v846_v24, %v849_v34 }
 0x3c1   : > { %v851_v36 = vmul.f32 1.442695, %v850_v35 }
 0x3c2   : > { %v746_v37 = vpop.permute.xlu1 %745 }
 0x3c3   : > { %1227 = vpow2.f32 %v851_v36  ;;  %v752_v38 = vsel %vm750_vm7, %v746_v37, 0 }
 0x3c4   : > { %1175 = vmatpush3.bf16.msra.mxu1 %v752_v38 }
 0x3c5   : > { %1186 = vmatprep.subr.bf16.mxu1 %v1244_v2 }
 0x3cd   : > { %v1228_v39 = vpop.eup %1227 }
 0x3ce   : > { %v853_v40 = vsel %vm728_vm6, %v1228_v39, 0.0 }
 0x3cf   : > { %854 = vadd.xlane.f32.xlu0 %v853_v40 }
 0x3e5   : > { %862 = vrot.lane.b32.xlu0 %v1372_v22, %s1252_s22 }
 0x3e9   : > { %v737_v41 = vpop.xlane.xlu0 %736 }
 0x3ea   : > { %1229 = vrcp.f32 %v737_v41 }
 0x3f4   : > { %v1230_v42 = vpop.eup %1229 }
 0x3f5   : > { %v739_v43 = vmul.f32 %v1230_v42, %v737_v41 }
 0x3f7   : > { %v740_v44 = vsub.f32 2.0, %v739_v43 }
 0x3f9   : > { %v741_v45 = vmul.f32 %v1230_v42, %v740_v44 }
 0x3fb   : > { %v742_v46 = vmul.f32 %v1226_v32, %v741_v45 }
 0x3fd   : > { %v743_v47 = vpack.c.bf16 %v742_v46, %v742_v46 }
 0x3ff   : > { %1177 = vmatmul.mubr.msk.bf16.vlgmr.msra.gmra.mrb[4].mxu1 %vm728_vm6, %v743_v47 }
 0x400   : > { %1188 = vmatprep.mubr.msk.bf16.mxu1 %vm1245_vm0, %v1244_v2  ;;  %v1126_v2 = vld [vmem:[%s1475_s7] ss:$0 sm:$0xff] }
 0x45c   : > { %v855_v48 = vpop.xlane.xlu0 %854 }
 0x45d   : > { %1231 = vrcp.f32 %v855_v48 }
 0x460   : > { %v863_v49 = vpop.permute.xlu0 %862 }
 0x461   : > { %v868_v50 = vsel %vm750_vm7, %v863_v49, 0 }
 0x462   : > { %1187 = vmatpush3.bf16.msra.mxu1 %v868_v50 }
 0x467   : > { %v1232_v22 = vpop.eup %1231 }
 0x468   : > { %v857_v51 = vmul.f32 %v1232_v22, %v855_v48 }
 0x46a   : > { %v858_v52 = vsub.f32 2.0, %v857_v51 }
 0x46c   : > { %v859_v53 = vmul.f32 %v1232_v22, %v858_v52 }
 0x46e   : > { %v860_v54 = vmul.f32 %v1228_v39, %v859_v53 }
 0x470   : > { %v861_v55 = vpack.c.bf16 %v860_v54, %v860_v54 }
 0x472   : > { %1189 = vmatmul.mubr.msk.bf16.vlgmr.msra.gmra.mrb[8].mxu1 %vm728_vm6, %v861_v55 }
 0x4d2   : > { %v788_v58 = vpop.f32.mrb[4].mxu1 }
 0x4d3   : > { %v1178_v59 = vpop.f32.mrb[5].mxu1 }
 0x4d4   : > { %v791_v60 = vpop.f32.mrb[6].mxu1 }
 0x4d5   : > { %v1179_v61 = vpop.f32.mrb[7].mxu1 }
 0x545   : > { %v904_v62 = vpop.f32.mrb[8].mxu1 }
 0x546   : > { %911 = vrot.lane.b32.xlu1 %v904_v62, %s1253_s27  ;;  %v1190_v63 = vpop.f32.mrb[9].mxu1 }
 0x547   : > { %v907_v0 = vpop.f32.mrb[10].mxu1 }
 0x548   : > { %v1191_v1 = vpop.f32.mrb[11].mxu1 }
 0x5b8   : > { %v912_v3 = vpop.permute.xlu1 %911 }
 0x5b9   : > { %v914_v5 = vsel %vm680_vm4, %v788_v58, %v912_v3 }
 0x5ba   : > { %v915_v6 = vpack.c.bf16 %v914_v5, %v914_v5 }
 0x5bc   : > { %1197 = vmatmul.mubr.msk.bf16.vlgmr.msra.gmra.mrb[12].mxu0 %vm489_vm1, %v915_v6 }
 0x68f   : > { %v976_v7 = vpop.f32.mrb[12].mxu0 }
 0x690   : > { %v977_v8 = vadd.f32 %v1126_v2, %v976_v7  ;;  %v1198_v9 = vpop.f32.mrb[13].mxu0 }
 0x691   : > { %v979_v10 = vpop.f32.mrb[14].mxu0 }
 0x692   : > { %v1199_v11 = vpop.f32.mrb[15].mxu0  ;;  %v982_v12 = vadd.f32 %v977_v8, %v1355_v4  ;;  %v1130_v4 = vld [vmem:[%s1476_s8] ss:$0 sm:$0xff] }
 0x694   : > { %v983_v13 = vsel %vm489_vm1, %v982_v12, 0.0 }
 0x695   : > { %984 = vadd.xlane.f32.xlu1 %v983_v13 }
 0x722   : > { %v985_v14 = vpop.xlane.xlu1 %984 }
 0x723   : > { %v987_v15 = vmul.f32 0.03125, %v985_v14 }
 0x725   : > { %v988_v16 = vsub.f32 %v982_v12, %v987_v15 }
 0x727   : > { %v989_v17 = vmul.f32 %v988_v16, %v988_v16 }
 0x729   : > { %v990_v18 = vsel %vm489_vm1, %v989_v17, 0.0 }
 0x72a   : > { %991 = vadd.xlane.f32.xlu0 %v990_v18 }
 0x7b7   : > { %v992_v19 = vpop.xlane.xlu0 %991 }
 0x7b8   : > { %v993_v20 = vmul.f32 0.03125, %v992_v19 }
 0x7ba   : > { %v994_v21 = vadd.f32 0.0001, %v993_v20 }
 0x7bc   : > { %1233 = vrsqrt.f32 %v994_v21 }
 0x7c6   : > { %v1234_v23 = vpop.eup %1233 }
 0x7c7   : > { %v996_v24 = vmul.f32 %v1234_v23, %v988_v16 }
 0x7c9   : > { %v1004_v26 = vmul.f32 %v1130_v4, %v996_v24 }
 0x7cb   : > { %v1012_v27 = vadd.f32 %v1131_v25, %v1004_v26 }
 0x7cd   : > { %1013 = vst.msk [vmem:[%s459_s19] sm:$0xff] %vm489_vm1, %v1012_v27 }
 0x7ce PF: > { %s22_s21 = sadd.s32 1, %s1241_s21  }
 0x7cf   : > { %p19_p4 = scmp.ge.s32.totalorder %s22_s21, 4  }
 0x7d1   :  { %21 = sbr.rel (!%p19_p4) target bundleno = 1 (0x1), region = 111 }

</bundles_post_ra>
